<compile_context>
chip_gen: v6e
topology: v6e:2x2x1
jax: 0.10.0
libtpu: 0.0.40
codegen_flags: <defaults>
</compile_context>

<pallas_src>
import functools
import math

import jax
import jax.numpy as jnp
from jax import lax
from jax.experimental import pallas as pl
from jax.experimental.pallas import tpu as pltpu


# ----------------------------------------------------------------------------
# Fused Pallas kernel (one graph per grid step)
# ----------------------------------------------------------------------------
def fused_forward_kernel(a_ref, dinv_ref, x_ref, w1_ref, b1_ref, m1_ref,
                         wn1_ref, bn1_ref, m2_ref, w2_ref, b2_ref, o_ref):
    f32 = jnp.float32
    bf16 = jnp.bfloat16

    a_bf = a_ref[...]                   # (N, N) bf16 {0,1} adjacency, A[dst, src]
    dinv = dinv_ref[...]                # (N, 1) f32, precomputed rsqrt(deg + 1)
    x0 = x_ref[...]                     # (N, ninp) f32 embedding table

    hid = wn1_ref.shape[0]
    gate_scale = 1.0 / math.sqrt(hid)

    # ---- gnn1: GCNConv(ninp -> hid), symmetric norm + implicit self loops --
    # aggregate BEFORE the linear (ninp < hid): cheaper N*N contraction
    xs = dinv * x0
    agg = dinv * (jnp.dot(a_bf, xs.astype(bf16), preferred_element_type=f32) + xs)
    h1 = (jnp.dot(agg.astype(bf16), w1_ref[...], preferred_element_type=f32)
          + b1_ref[...])
    # F.normalize(dim=-1, p=2) fused here (rsqrt -> EUP slot)
    h1 = h1 * lax.rsqrt(jnp.maximum(jnp.sum(h1 * h1, axis=-1, keepdims=True),
                                    1e-24))
    h1_bf = h1.astype(bf16)

    # ---- EdgeEncoder: per-edge sigmoid gate, score = (h M) h^T, M = Wq Wk^T -
    def edge_gate(h_bf, m_ref):
        hm = jnp.dot(h_bf, m_ref[...], preferred_element_type=f32)     # (N, hid)
        score = lax.dot_general(hm.astype(bf16), h_bf,
                                (((1,), (1,)), ((), ())),
                                preferred_element_type=f32) * gate_scale
        # TODO(synk): if the bundle dump shows the EUP slot binding, replace
        # sigmoid with 0.5*(tanh(0.5*score)+1.0) (half the EUP pushes).
        return jnp.where(a_bf != 0, jax.nn.sigmoid(score), 0.0)        # f32

    # ---- NodeEncoder: relu( Aw @ (H W) + b ); dropout(0.8) eval = identity -
    def node_layer(aw_bf, h_bf, wn_ref, bn_ref):
        z = jnp.dot(h_bf, wn_ref[...], preferred_element_type=f32)
        agg = jnp.dot(aw_bf, z.astype(bf16), preferred_element_type=f32)
        return jnp.maximum(agg + bn_ref[...], 0.0)

    aw1_bf = edge_gate(h1_bf, m1_ref).astype(bf16)          # gnn_edge_1
    h2 = node_layer(aw1_bf, h1_bf, wn1_ref, bn1_ref)        # gnn_node_1
    h2_bf = h2.astype(bf16)

    aw2 = edge_gate(h2_bf, m2_ref)                          # gnn_edge_2 (f32)
    dinv2 = lax.rsqrt(jnp.sum(aw2, axis=-1, keepdims=True) + 1.0)
    aw2_bf = aw2.astype(bf16)                               # only bf16 stays live

    # Reference forward calls self.gnn_node_1 twice (gnn_node_2 is unused),
    # so the weights really are shared here.
    h3 = node_layer(aw2_bf, h2_bf, wn1_ref, bn1_ref)

    # ---- gnn2: GCNConv(hid -> ninp) with edge_weight = aw2 -----------------
    # linear BEFORE aggregation (hid > ninp)
    z2 = jnp.dot(h3.astype(bf16), w2_ref[...], preferred_element_type=f32)
    zs = dinv2 * z2
    out = dinv2 * (jnp.dot(aw2_bf, zs.astype(bf16),
                           preferred_element_type=f32) + zs)
    o_ref[...] = (out + b2_ref[...]).astype(o_ref.dtype)


# ----------------------------------------------------------------------------
# Wrapper
# ----------------------------------------------------------------------------
def fused_forward(adj, dinv, params):
    """Fused forward over a batch of graphs; grid axis = graph index.

    Per-graph VMEM at N=128 is well under 1 MiB, so each graph is processed
    whole-array; the leading grid axis is marked "parallel" (megacore on v7x,
    cross-graph DMA/compute overlap everywhere).  Weights use a constant
    index_map so they stay resident across grid steps.

    Scaling plan for large N (document + limit set now): the only N^2-scale
    live values are the bf16 adjacency and one bf16 gate (aw2) plus a
    transient f32 score tile.  At N ~ 2048 that is ~24 MiB, near v7x's 32 MiB
    default scoped VMEM; beyond that, tile the gate/node stages over
    destination-row blocks (score_r = (h_r M) h^T, h_next_r = relu(aw_r z)),
    keep the (N,hid) activations resident, recompute aw2 row blocks for the
    gnn2 aggregation pass, and raise vmem_limit_bytes accordingly.
    """
    b, n, _ = adj.shape
    ninp = params["w2"].shape[1]

    def full_spec(x):
        return pl.BlockSpec(x.shape, lambda g, nd=x.ndim: (0,) * nd)

    weights = (params["emb"], params["w1"], params["b1"], params["m1"],
               params["wn1"], params["bn1"], params["m2"], params["w2"],
               params["b2"])

    in_specs = ([pl.BlockSpec((None, n, n), lambda g: (g, 0, 0)),
                 pl.BlockSpec((None, n, 1), lambda g: (g, 0, 0))]
                + [full_spec(w) for w in weights])

    return pl.pallas_call(
        fused_forward_kernel,
        grid=(b,),
        out_shape=jax.ShapeDtypeStruct((b, n, ninp), jnp.float32),
        in_specs=in_specs,
        out_specs=pl.BlockSpec((None, n, ninp), lambda g: (g, 0, 0)),
        compiler_params=pltpu.CompilerParams(
            dimension_semantics=("parallel",),
            vmem_limit_bytes=32 * 1024 * 1024),
    )(adj, dinv, *weights)


# ----------------------------------------------------------------------------
# Parameter setup + forward glue (plain JAX)
# ----------------------------------------------------------------------------
def init_params(key, ntoken, ninp):
    hid = ninp * 2
    ks = jax.random.split(key, 8)
    bf16 = jnp.bfloat16

    def glorot(k, shape):
        std = math.sqrt(2.0 / (shape[0] + shape[1]))
        return jax.random.normal(k, shape, jnp.float32) * std

    # nn.Embedding(ntoken, ninp, padding_idx=0) + xavier_normal_
    emb = glorot(ks[0], (ntoken, ninp)).at[0].set(0.0)

    # EdgeEncoder q/k projections folded into a single M = Wq @ Wk^T (f32,
    # then cast once to bf16) -> score = (h M) h^T inside the kernel.
    wq1, wk1 = glorot(ks[3], (hid, hid)), glorot(ks[4], (hid, hid))
    wq2, wk2 = glorot(ks[5], (hid, hid)), glorot(ks[6], (hid, hid))

    return dict(
        emb=emb,                                            # f32 (scaled elementwise in-kernel)
        # gnn1: GCNConv(ninp, 2*ninp)
        w1=glorot(ks[1], (ninp, hid)).astype(bf16),
        b1=jnp.zeros((1, hid), jnp.float32),
        # gnn_node_1: NodeEncoder(2*ninp -> 2*ninp)  (shared for both node layers,
        # matching the reference forward which never calls gnn_node_2)
        wn1=glorot(ks[2], (hid, hid)).astype(bf16),
        bn1=jnp.zeros((1, hid), jnp.float32),
        # gnn_edge_1 / gnn_edge_2
        m1=(wq1 @ wk1.T).astype(bf16),
        m2=(wq2 @ wk2.T).astype(bf16),
        # gnn2: GCNConv(2*ninp, ninp)
        w2=glorot(ks[7], (hid, ninp)).astype(bf16),
        b2=jnp.zeros((1, ninp), jnp.float32),
    )


def dense_adjacency(edge_index, n):
    # A[dst, src] = 1.0 for every edge src -> dst, built directly in bf16
    # (0/1 exact).  TODO(synk): duplicate edges collapse to weight 1.0
    # (.set); use .add if the reference counts edge multiplicity.
    src, dst = edge_index[0], edge_index[1]
    return jnp.zeros((n, n), jnp.bfloat16).at[dst, src].set(1.0)


def forward(params, edge_index, ntoken):
    # TODO(synk): NodeEncoder / EdgeEncoder definitions are not in the source
    # file; plausible sigmoid-gated-edge / weighted-aggregation semantics are
    # implemented (documented at the top of this script).
    if edge_index.ndim == 2:          # single graph -> batch of 1
        edge_index = edge_index[None]
    adj = jax.vmap(lambda ei: dense_adjacency(ei, ntoken))(edge_index)  # (B,N,N) bf16
    # gnn1 degree normalization precomputed outside the kernel (cheap XLA op)
    deg = jnp.sum(adj.astype(jnp.float32), axis=-1, keepdims=True) + 1.0
    dinv = lax.rsqrt(deg)                                               # (B,N,1) f32
    return fused_forward(adj, dinv, params)                             # (B,N,ninp)


# ----------------------------------------------------------------------------
if __name__ == "__main__":
    NTOKEN = 128   # number of graph nodes / vocab size
    NINP = 64      # input embedding dim (hidden = 128)
    NUM_EDGES = 512
    BATCH = 2      # two independent graphs -> exercises the "parallel" grid axis

    key = jax.random.PRNGKey(0)
    k_param, k_edges = jax.random.split(key)

    params = init_params(k_param, NTOKEN, NINP)
    edge_index = jax.random.randint(k_edges, (BATCH, 2, NUM_EDGES), 0, NTOKEN,
                                    jnp.int32)               # (B, 2, E)

    out = jax.jit(functools.partial(forward, ntoken=NTOKEN))(params, edge_index)
    out = jax.block_until_ready(out)

    assert out.shape == (BATCH, NTOKEN, NINP)
    assert bool(jnp.all(jnp.isfinite(out)))
    print("KERNEL_OK")
</pallas_src>

<mosaic_0001>
module attributes {stable_mosaic.version = 11 : i64} {
  func.func @fused_forward_kernel(%arg0: i32, %arg1: memref<1x128x128xbf16, #tpu.memory_space<vmem>>, %arg2: memref<1x128x1xf32, #tpu.memory_space<vmem>>, %arg3: memref<128x64xf32, #tpu.memory_space<vmem>>, %arg4: memref<64x128xbf16, #tpu.memory_space<vmem>>, %arg5: memref<1x128xf32, #tpu.memory_space<vmem>>, %arg6: memref<128x128xbf16, #tpu.memory_space<vmem>>, %arg7: memref<128x128xbf16, #tpu.memory_space<vmem>>, %arg8: memref<1x128xf32, #tpu.memory_space<vmem>>, %arg9: memref<128x128xbf16, #tpu.memory_space<vmem>>, %arg10: memref<128x64xbf16, #tpu.memory_space<vmem>>, %arg11: memref<1x64xf32, #tpu.memory_space<vmem>>, %arg12: memref<1x128x64xf32, #tpu.memory_space<vmem>>) attributes {dimension_semantics = [#tpu.dimension_semantics<parallel>], iteration_bounds = array<i64: 2>, scalar_prefetch = 0 : i64, scratch_operands = 0 : i64, tpu.core_type = #tpu.core_type<tc>, window_params = [{transform_indices = @transform_0, window_bounds = array<i64: 1, 128, 128>}, {transform_indices = @transform_1, window_bounds = array<i64: 1, 128, 1>}, {pipeline_mode = #tpu.pipeline_mode<synchronous>, transform_indices = @transform_2, window_bounds = array<i64: 128, 64>}, {pipeline_mode = #tpu.pipeline_mode<synchronous>, transform_indices = @transform_3, window_bounds = array<i64: 64, 128>}, {pipeline_mode = #tpu.pipeline_mode<synchronous>, transform_indices = @transform_4, window_bounds = array<i64: 1, 128>}, {pipeline_mode = #tpu.pipeline_mode<synchronous>, transform_indices = @transform_5, window_bounds = array<i64: 128, 128>}, {pipeline_mode = #tpu.pipeline_mode<synchronous>, transform_indices = @transform_6, window_bounds = array<i64: 128, 128>}, {pipeline_mode = #tpu.pipeline_mode<synchronous>, transform_indices = @transform_7, window_bounds = array<i64: 1, 128>}, {pipeline_mode = #tpu.pipeline_mode<synchronous>, transform_indices = @transform_8, window_bounds = array<i64: 128, 128>}, {pipeline_mode = #tpu.pipeline_mode<synchronous>, transform_indices = @transform_9, window_bounds = array<i64: 128, 64>}, {pipeline_mode = #tpu.pipeline_mode<synchronous>, transform_indices = @transform_10, window_bounds = array<i64: 1, 64>}, {transform_indices = @transform_11, window_bounds = array<i64: 1, 128, 64>}]} {
    %c0 = arith.constant 0 : index
    %c0_0 = arith.constant 0 : index
    %c0_1 = arith.constant 0 : index
    %0 = vector.load %arg1[%c0, %c0_0, %c0_1] : memref<1x128x128xbf16, #tpu.memory_space<vmem>>, vector<1x128x128xbf16>
    %1 = vector.shape_cast %0 : vector<1x128x128xbf16> to vector<128x128xbf16>
    %c0_2 = arith.constant 0 : index
    %c0_3 = arith.constant 0 : index
    %c0_4 = arith.constant 0 : index
    %2 = vector.load %arg2[%c0_2, %c0_3, %c0_4] : memref<1x128x1xf32, #tpu.memory_space<vmem>>, vector<1x128x1xf32>
    %3 = vector.shape_cast %2 : vector<1x128x1xf32> to vector<128x1xf32>
    %c0_5 = arith.constant 0 : index
    %c0_6 = arith.constant 0 : index
    %4 = vector.load %arg3[%c0_5, %c0_6] : memref<128x64xf32, #tpu.memory_space<vmem>>, vector<128x64xf32>
    %5 = vector.broadcast %3 : vector<128x1xf32> to vector<128x64xf32>
    %6 = arith.mulf %5, %4 : vector<128x64xf32>
    %7 = arith.truncf %6 : vector<128x64xf32> to vector<128x64xbf16>
    %cst = arith.constant dense<0.000000e+00> : vector<128x64xf32>
    %8 = tpu.matmul %1, %7, %cst {dimension_numbers = #tpu.dot_dimension_numbers<[1], [0], [0], [1], [0, 0, 1, 1], [], []>} : vector<128x128xbf16>, vector<128x64xbf16>, vector<128x64xf32> -> vector<128x64xf32>
    %9 = arith.addf %8, %6 : vector<128x64xf32>
    %10 = vector.broadcast %3 : vector<128x1xf32> to vector<128x64xf32>
    %11 = arith.mulf %10, %9 : vector<128x64xf32>
    %12 = arith.truncf %11 : vector<128x64xf32> to vector<128x64xbf16>
    %c0_7 = arith.constant 0 : index
    %c0_8 = arith.constant 0 : index
    %13 = vector.load %arg4[%c0_7, %c0_8] : memref<64x128xbf16, #tpu.memory_space<vmem>>, vector<64x128xbf16>
    %cst_9 = arith.constant dense<0.000000e+00> : vector<128x128xf32>
    %14 = tpu.matmul %12, %13, %cst_9 {dimension_numbers = #tpu.dot_dimension_numbers<[1], [0], [0], [1], [0, 0, 1, 1], [], []>} : vector<128x64xbf16>, vector<64x128xbf16>, vector<128x128xf32> -> vector<128x128xf32>
    %c0_10 = arith.constant 0 : index
    %c0_11 = arith.constant 0 : index
    %15 = vector.load %arg5[%c0_10, %c0_11] : memref<1x128xf32, #tpu.memory_space<vmem>>, vector<1x128xf32>
    %16 = vector.broadcast %15 : vector<1x128xf32> to vector<128x128xf32>
    %17 = arith.addf %14, %16 : vector<128x128xf32>
    %18 = arith.mulf %17, %17 : vector<128x128xf32>
    %cst_12 = arith.constant dense<0.000000e+00> : vector<128xf32>
    %19 = vector.multi_reduction <add>, %18, %cst_12 [1] : vector<128x128xf32> to vector<128xf32>
    %20 = vector.shape_cast %19 : vector<128xf32> to vector<128x1xf32>
    %cst_13 = arith.constant 1.000000e-24 : f32
    %21 = vector.broadcast %cst_13 : f32 to vector<128x1xf32>
    %22 = arith.maximumf %20, %21 : vector<128x1xf32>
    %23 = math.rsqrt %22 : vector<128x1xf32>
    %24 = vector.broadcast %23 : vector<128x1xf32> to vector<128x128xf32>
    %25 = arith.mulf %17, %24 : vector<128x128xf32>
    %26 = arith.truncf %25 : vector<128x128xf32> to vector<128x128xbf16>
    %c0_14 = arith.constant 0 : index
    %c0_15 = arith.constant 0 : index
    %27 = vector.load %arg6[%c0_14, %c0_15] : memref<128x128xbf16, #tpu.memory_space<vmem>>, vector<128x128xbf16>
    %cst_16 = arith.constant dense<0.000000e+00> : vector<128x128xf32>
    %28 = tpu.matmul %26, %27, %cst_16 {dimension_numbers = #tpu.dot_dimension_numbers<[1], [0], [0], [1], [0, 0, 1, 1], [], []>} : vector<128x128xbf16>, vector<128x128xbf16>, vector<128x128xf32> -> vector<128x128xf32>
    %29 = arith.truncf %28 : vector<128x128xf32> to vector<128x128xbf16>
    %cst_17 = arith.constant dense<0.000000e+00> : vector<128x128xf32>
    %30 = tpu.matmul %29, %26, %cst_17 {dimension_numbers = #tpu.dot_dimension_numbers<[1], [1], [0], [0], [0, 0, 1, 0], [], []>} : vector<128x128xbf16>, vector<128x128xbf16>, vector<128x128xf32> -> vector<128x128xf32>
    %cst_18 = arith.constant 0.0883883461 : f32
    %31 = vector.broadcast %cst_18 : f32 to vector<128x128xf32>
    %32 = arith.mulf %30, %31 : vector<128x128xf32>
    %cst_19 = arith.constant 0.000000e+00 : bf16
    %33 = vector.broadcast %cst_19 : bf16 to vector<128x128xbf16>
    %34 = arith.cmpf one, %1, %33 : vector<128x128xbf16>
    %35 = arith.negf %32 : vector<128x128xf32>
    %36 = math.exp %35 : vector<128x128xf32>
    %cst_20 = arith.constant 1.000000e+00 : f32
    %37 = vector.broadcast %cst_20 : f32 to vector<128x128xf32>
    %38 = arith.addf %37, %36 : vector<128x128xf32>
    %39 = arith.divf %37, %38 : vector<128x128xf32>
    %cst_21 = arith.constant 0.000000e+00 : f32
    %40 = vector.broadcast %cst_21 : f32 to vector<128x128xf32>
    %41 = arith.select %34, %39, %40 : vector<128x128xi1>, vector<128x128xf32>
    %42 = arith.truncf %41 : vector<128x128xf32> to vector<128x128xbf16>
    %c0_22 = arith.constant 0 : index
    %c0_23 = arith.constant 0 : index
    %43 = vector.load %arg7[%c0_22, %c0_23] : memref<128x128xbf16, #tpu.memory_space<vmem>>, vector<128x128xbf16>
    %cst_24 = arith.constant dense<0.000000e+00> : vector<128x128xf32>
    %44 = tpu.matmul %26, %43, %cst_24 {dimension_numbers = #tpu.dot_dimension_numbers<[1], [0], [0], [1], [0, 0, 1, 1], [], []>} : vector<128x128xbf16>, vector<128x128xbf16>, vector<128x128xf32> -> vector<128x128xf32>
    %45 = arith.truncf %44 : vector<128x128xf32> to vector<128x128xbf16>
    %cst_25 = arith.constant dense<0.000000e+00> : vector<128x128xf32>
    %46 = tpu.matmul %42, %45, %cst_25 {dimension_numbers = #tpu.dot_dimension_numbers<[1], [0], [0], [1], [0, 0, 1, 1], [], []>} : vector<128x128xbf16>, vector<128x128xbf16>, vector<128x128xf32> -> vector<128x128xf32>
    %c0_26 = arith.constant 0 : index
    %c0_27 = arith.constant 0 : index
    %47 = vector.load %arg8[%c0_26, %c0_27] : memref<1x128xf32, #tpu.memory_space<vmem>>, vector<1x128xf32>
    %48 = vector.broadcast %47 : vector<1x128xf32> to vector<128x128xf32>
    %49 = arith.addf %46, %48 : vector<128x128xf32>
    %cst_28 = arith.constant 0.000000e+00 : f32
    %50 = vector.broadcast %cst_28 : f32 to vector<128x128xf32>
    %51 = arith.maximumf %49, %50 : vector<128x128xf32>
    %52 = arith.truncf %51 : vector<128x128xf32> to vector<128x128xbf16>
    %c0_29 = arith.constant 0 : index
    %c0_30 = arith.constant 0 : index
    %53 = vector.load %arg9[%c0_29, %c0_30] : memref<128x128xbf16, #tpu.memory_space<vmem>>, vector<128x128xbf16>
    %cst_31 = arith.constant dense<0.000000e+00> : vector<128x128xf32>
    %54 = tpu.matmul %52, %53, %cst_31 {dimension_numbers = #tpu.dot_dimension_numbers<[1], [0], [0], [1], [0, 0, 1, 1], [], []>} : vector<128x128xbf16>, vector<128x128xbf16>, vector<128x128xf32> -> vector<128x128xf32>
    %55 = arith.truncf %54 : vector<128x128xf32> to vector<128x128xbf16>
    %cst_32 = arith.constant dense<0.000000e+00> : vector<128x128xf32>
    %56 = tpu.matmul %55, %52, %cst_32 {dimension_numbers = #tpu.dot_dimension_numbers<[1], [1], [0], [0], [0, 0, 1, 0], [], []>} : vector<128x128xbf16>, vector<128x128xbf16>, vector<128x128xf32> -> vector<128x128xf32>
    %cst_33 = arith.constant 0.0883883461 : f32
    %57 = vector.broadcast %cst_33 : f32 to vector<128x128xf32>
    %58 = arith.mulf %56, %57 : vector<128x128xf32>
    %cst_34 = arith.constant 0.000000e+00 : bf16
    %59 = vector.broadcast %cst_34 : bf16 to vector<128x128xbf16>
    %60 = arith.cmpf one, %1, %59 : vector<128x128xbf16>
    %61 = arith.negf %58 : vector<128x128xf32>
    %62 = math.exp %61 : vector<128x128xf32>
    %cst_35 = arith.constant 1.000000e+00 : f32
    %63 = vector.broadcast %cst_35 : f32 to vector<128x128xf32>
    %64 = arith.addf %63, %62 : vector<128x128xf32>
    %65 = arith.divf %63, %64 : vector<128x128xf32>
    %cst_36 = arith.constant 0.000000e+00 : f32
    %66 = vector.broadcast %cst_36 : f32 to vector<128x128xf32>
    %67 = arith.select %60, %65, %66 : vector<128x128xi1>, vector<128x128xf32>
    %cst_37 = arith.constant dense<0.000000e+00> : vector<128xf32>
    %68 = vector.multi_reduction <add>, %67, %cst_37 [1] : vector<128x128xf32> to vector<128xf32>
    %69 = vector.shape_cast %68 : vector<128xf32> to vector<128x1xf32>
    %cst_38 = arith.constant 1.000000e+00 : f32
    %70 = vector.broadcast %cst_38 : f32 to vector<128x1xf32>
    %71 = arith.addf %69, %70 : vector<128x1xf32>
    %72 = math.rsqrt %71 : vector<128x1xf32>
    %73 = arith.truncf %67 : vector<128x128xf32> to vector<128x128xbf16>
    %c0_39 = arith.constant 0 : index
    %c0_40 = arith.constant 0 : index
    %74 = vector.load %arg7[%c0_39, %c0_40] : memref<128x128xbf16, #tpu.memory_space<vmem>>, vector<128x128xbf16>
    %cst_41 = arith.constant dense<0.000000e+00> : vector<128x128xf32>
    %75 = tpu.matmul %52, %74, %cst_41 {dimension_numbers = #tpu.dot_dimension_numbers<[1], [0], [0], [1], [0, 0, 1, 1], [], []>} : vector<128x128xbf16>, vector<128x128xbf16>, vector<128x128xf32> -> vector<128x128xf32>
    %76 = arith.truncf %75 : vector<128x128xf32> to vector<128x128xbf16>
    %cst_42 = arith.constant dense<0.000000e+00> : vector<128x128xf32>
    %77 = tpu.matmul %73, %76, %cst_42 {dimension_numbers = #tpu.dot_dimension_numbers<[1], [0], [0], [1], [0, 0, 1, 1], [], []>} : vector<128x128xbf16>, vector<128x128xbf16>, vector<128x128xf32> -> vector<128x128xf32>
    %c0_43 = arith.constant 0 : index
    %c0_44 = arith.constant 0 : index
    %78 = vector.load %arg8[%c0_43, %c0_44] : memref<1x128xf32, #tpu.memory_space<vmem>>, vector<1x128xf32>
    %79 = vector.broadcast %78 : vector<1x128xf32> to vector<128x128xf32>
    %80 = arith.addf %77, %79 : vector<128x128xf32>
    %cst_45 = arith.constant 0.000000e+00 : f32
    %81 = vector.broadcast %cst_45 : f32 to vector<128x128xf32>
    %82 = arith.maximumf %80, %81 : vector<128x128xf32>
    %83 = arith.truncf %82 : vector<128x128xf32> to vector<128x128xbf16>
    %c0_46 = arith.constant 0 : index
    %c0_47 = arith.constant 0 : index
    %84 = vector.load %arg10[%c0_46, %c0_47] : memref<128x64xbf16, #tpu.memory_space<vmem>>, vector<128x64xbf16>
    %cst_48 = arith.constant dense<0.000000e+00> : vector<128x64xf32>
    %85 = tpu.matmul %83, %84, %cst_48 {dimension_numbers = #tpu.dot_dimension_numbers<[1], [0], [0], [1], [0, 0, 1, 1], [], []>} : vector<128x128xbf16>, vector<128x64xbf16>, vector<128x64xf32> -> vector<128x64xf32>
    %86 = vector.broadcast %72 : vector<128x1xf32> to vector<128x64xf32>
    %87 = arith.mulf %86, %85 : vector<128x64xf32>
    %88 = arith.truncf %87 : vector<128x64xf32> to vector<128x64xbf16>
    %cst_49 = arith.constant dense<0.000000e+00> : vector<128x64xf32>
    %89 = tpu.matmul %73, %88, %cst_49 {dimension_numbers = #tpu.dot_dimension_numbers<[1], [0], [0], [1], [0, 0, 1, 1], [], []>} : vector<128x128xbf16>, vector<128x64xbf16>, vector<128x64xf32> -> vector<128x64xf32>
    %90 = arith.addf %89, %87 : vector<128x64xf32>
    %91 = vector.broadcast %72 : vector<128x1xf32> to vector<128x64xf32>
    %92 = arith.mulf %91, %90 : vector<128x64xf32>
    %c0_50 = arith.constant 0 : index
    %c0_51 = arith.constant 0 : index
    %93 = vector.load %arg11[%c0_50, %c0_51] : memref<1x64xf32, #tpu.memory_space<vmem>>, vector<1x64xf32>
    %94 = vector.broadcast %93 : vector<1x64xf32> to vector<128x64xf32>
    %95 = arith.addf %92, %94 : vector<128x64xf32>
    %c0_52 = arith.constant 0 : index
    %c0_53 = arith.constant 0 : index
    %c0_54 = arith.constant 0 : index
    %96 = vector.load %arg12[%c0_52, %c0_53, %c0_54] : memref<1x128x64xf32, #tpu.memory_space<vmem>>, vector<1x128x64xf32>
    %97 = vector.shape_cast %96 : vector<1x128x64xf32> to vector<128x64xf32>
    %98 = vector.shape_cast %95 : vector<128x64xf32> to vector<1x128x64xf32>
    tpu.vector_store %arg12[%c0_52, %c0_53, %c0_54], %98 {strides = array<i32>} : memref<1x128x64xf32, #tpu.memory_space<vmem>>, vector<1x128x64xf32>,
    return
  }
  func.func @transform_0(%arg0: i32) -> (i32, i32, i32) {
    %c0_i32 = arith.constant 0 : i32
    %c0_i32_0 = arith.constant 0 : i32
    %c0_i32_1 = arith.constant 0 : i32
    return %arg0, %c0_i32, %c0_i32_0 : i32, i32, i32
  }
  func.func @transform_1(%arg0: i32) -> (i32, i32, i32) {
    %c0_i32 = arith.constant 0 : i32
    %c0_i32_0 = arith.constant 0 : i32
    %c0_i32_1 = arith.constant 0 : i32
    return %arg0, %c0_i32, %c0_i32_0 : i32, i32, i32
  }
  func.func @transform_2(%arg0: i32) -> (i32, i32) {
    %c0_i32 = arith.constant 0 : i32
    %c0_i32_0 = arith.constant 0 : i32
    %c0_i32_1 = arith.constant 0 : i32
    return %c0_i32, %c0_i32_0 : i32, i32
  }
  func.func @transform_3(%arg0: i32) -> (i32, i32) {
    %c0_i32 = arith.constant 0 : i32
    %c0_i32_0 = arith.constant 0 : i32
    %c0_i32_1 = arith.constant 0 : i32
    return %c0_i32, %c0_i32_0 : i32, i32
  }
  func.func @transform_4(%arg0: i32) -> (i32, i32) {
    %c0_i32 = arith.constant 0 : i32
    %c0_i32_0 = arith.constant 0 : i32
    %c0_i32_1 = arith.constant 0 : i32
    return %c0_i32, %c0_i32_0 : i32, i32
  }
  func.func @transform_5(%arg0: i32) -> (i32, i32) {
    %c0_i32 = arith.constant 0 : i32
    %c0_i32_0 = arith.constant 0 : i32
    %c0_i32_1 = arith.constant 0 : i32
    return %c0_i32, %c0_i32_0 : i32, i32
  }
  func.func @transform_6(%arg0: i32) -> (i32, i32) {
    %c0_i32 = arith.constant 0 : i32
    %c0_i32_0 = arith.constant 0 : i32
    %c0_i32_1 = arith.constant 0 : i32
    return %c0_i32, %c0_i32_0 : i32, i32
  }
  func.func @transform_7(%arg0: i32) -> (i32, i32) {
    %c0_i32 = arith.constant 0 : i32
    %c0_i32_0 = arith.constant 0 : i32
    %c0_i32_1 = arith.constant 0 : i32
    return %c0_i32, %c0_i32_0 : i32, i32
  }
  func.func @transform_8(%arg0: i32) -> (i32, i32) {
    %c0_i32 = arith.constant 0 : i32
    %c0_i32_0 = arith.constant 0 : i32
    %c0_i32_1 = arith.constant 0 : i32
    return %c0_i32, %c0_i32_0 : i32, i32
  }
  func.func @transform_9(%arg0: i32) -> (i32, i32) {
    %c0_i32 = arith.constant 0 : i32
    %c0_i32_0 = arith.constant 0 : i32
    %c0_i32_1 = arith.constant 0 : i32
    return %c0_i32, %c0_i32_0 : i32, i32
  }
  func.func @transform_10(%arg0: i32) -> (i32, i32) {
    %c0_i32 = arith.constant 0 : i32
    %c0_i32_0 = arith.constant 0 : i32
    %c0_i32_1 = arith.constant 0 : i32
    return %c0_i32, %c0_i32_0 : i32, i32
  }
  func.func @transform_11(%arg0: i32) -> (i32, i32, i32) {
    %c0_i32 = arith.constant 0 : i32
    %c0_i32_0 = arith.constant 0 : i32
    %c0_i32_1 = arith.constant 0 : i32
    return %arg0, %c0_i32, %c0_i32_0 : i32, i32, i32
  }
}

</mosaic_0001>

<bundles_post_ra>
// kernel: forward.1
= control target key start
LH: loop header
LB: loop body
LE: loop exit
PB: predicated region body
PF: predicated region fallthrough
CT: control target
= control target key end

     0   :  { %s3940_s17 = smov 0   ;;  %s4954_s0 = inlined_call_operand.vmem [shape: bf16[2,128,128], index: 0, kind: input, shape index: {}]   ;;  %s4955_s1 = inlined_call_operand.vmem [shape: f32[2,128,1], index: 1, kind: input, shape index: {}]   ;;  %s4956_s2 = inlined_call_operand.vmem [shape: f32[128,64], index: 2, kind: input, shape index: {}]   ;;  %s4957_s3 = inlined_call_operand.vmem [shape: bf16[64,128], index: 3, kind: input, shape index: {}]   ;;  %s4958_s4 = inlined_call_operand.vmem [shape: f32[1,128], index: 4, kind: input, shape index: {}]   ;;  %s4959_s5 = inlined_call_operand.vmem [shape: bf16[128,128], index: 5, kind: input, shape index: {}]   ;;  %s4960_s6 = inlined_call_operand.vmem [shape: bf16[128,128], index: 6, kind: input, shape index: {}]   ;;  %s4961_s7 = inlined_call_operand.vmem [shape: f32[1,128], index: 7, kind: input, shape index: {}]   ;;  %s4962_s8 = inlined_call_operand.vmem [shape: bf16[128,128], index: 8, kind: input, shape index: {}]   ;;  %s4963_s9 = inlined_call_operand.vmem [shape: bf16[128,64], index: 9, kind: input, shape index: {}]   ;;  %s4964_s10 = inlined_call_operand.vmem [shape: f32[1,64], index: 10, kind: input, shape index: {}]   ;;  %s4965_s11 = inlined_call_operand.vmem [shape: f32[2,128,64], index: 11, kind: output, shape index: {}]  }
   0x1 LB: > { %s2855_s18 = sadd.s32 4294967295, %s3877_s17   ;;  %p2859_p0 = scmp.ge.s32.totalorder %s3877_s17, 1  ;;  %s3877_s17 = sphi %s3940_s17, %s21_s17  }
   0x2   : > { %p347_p1 = scmp.lt.s32.totalorder %s3877_s17, 3 }
   0x4   : > { %p348_p2 = pnand %p2859_p0, %p347_p1 }
   0x5   : > { %p392_p3 = scmp.lt.s32.totalorder (!%p348_p2), %s2855_s18, 1 }
   0x6   : > { %351 = sbr.rel (%p348_p2) target bundleno = 2518 (0x9d6), region = 64 }
   0xb   : > { %v3879_v0 = vmov 0   ;;  %s5048_s18 = smov (!%p392_p3, %s2855_s18), 1  ;;  %v3629_v20 = vld [vmem:[%s4957_s3 + $0x18] sm:$0xff]   ;;  %v456_v23 = vld [vmem:[%s4956_s2 + $0x70] sm:$0xff]  ;;  %v454_v24 = vld [vmem:[%s4956_s2 + $0x60] sm:$0xff]  ;;  %vm4966_vm0 = vcmask 523264  }
   0xc   : > { %3620 = vset.pattern.permute.xlu1 %v3879_v0  ;;  %3619 = vset.pattern.permute.xlu0 %v3879_v0  ;;  %s3028_s19 = sshll.u32 %s5048_s18, 7  ;;  %s3027_s23 = sshll.u32 %s5048_s18, 6  ;;  %v457_v25 = vld [vmem:[%s4956_s2 + $0x78] sm:$0xff]  ;;  %v455_v26 = vld [vmem:[%s4956_s2 + $0x68] sm:$0xff]  ;;  %v452_v34 = vld [vmem:[%s4956_s2 + $0x50] sm:$0xff] }
   0xd   : > { %s401_s22 = scalar_lea.vmem %s4955_s1, %s3028_s19  ;;  %s3962_s26 = scalar_lea.vmem %s4954_s0, %s3027_s23  ;;  %3250 = vmatprep.subr.bf16.mxu1 %v3629_v20  ;;  %v453_v33 = vld [vmem:[%s4956_s2 + $0x58] sm:$0xff]  ;;  %v451_v41 = vld [vmem:[%s4956_s2 + $0x48] sm:$0xff]  ;;  %v450_v42 = vld [vmem:[%s4956_s2 + $0x40] sm:$0xff] }
   0xe   : > { %v440_v1 = vld [vmem:[%s401_s22 + $0x70] sm:$0xff]  ;;  %v438_v2 = vld [vmem:[%s401_s22 + $0x60] sm:$0xff]  ;;  %v441_v3 = vld [vmem:[%s401_s22 + $0x78] sm:$0xff]  ;;  %3251 = vmatpush3.bf16.msra.mxu1 %v3629_v20  ;;  %s4880_s13 = scalar_lea.vmem %s4965_s11, %s3028_s19 }
   0xf   : > { %530 = vperm.xlu0 %3619, %v440_v1   ;;  %520 = vperm.xlu1 %3620, %v438_v2   ;;  %v439_v4 = vld [vmem:[%s401_s22 + $0x68] sm:$0xff]  ;;  %v437_v5 = vld [vmem:[%s401_s22 + $0x58] sm:$0xff]  ;;  %v436_v6 = vld [vmem:[%s401_s22 + $0x50] sm:$0xff] }
  0x10   : > { %v435_v7 = vld [vmem:[%s401_s22 + $0x48] sm:$0xff]  ;;  %v434_v8 = vld [vmem:[%s401_s22 + $0x40] sm:$0xff]  ;;  %v433_v9 = vld [vmem:[%s401_s22 + $0x38] sm:$0xff] }
  0x11   : > { %v432_v10 = vld [vmem:[%s401_s22 + $0x30] sm:$0xff]  ;;  %v431_v11 = vld [vmem:[%s401_s22 + $0x28] sm:$0xff]  ;;  %v430_v12 = vld [vmem:[%s401_s22 + $0x20] sm:$0xff] }
  0x12   : > { %v429_v13 = vld [vmem:[%s401_s22 + $0x18] sm:$0xff]  ;;  %v428_v14 = vld [vmem:[%s401_s22 + $0x10] sm:$0xff]  ;;  %v427_v15 = vld [vmem:[%s401_s22 + $0x8] sm:$0xff] }
  0x13   : > { %535 = vperm.xlu0 %3619, %v441_v3   ;;  %525 = vperm.xlu1 %3620, %v439_v4   ;;  %v426_v16 = vld [vmem:[%s401_s22] sm:$0xff]  ;;  %v449_v48 = vld [vmem:[%s4956_s2 + $0x38] sm:$0xff]  ;;  %v448_v49 = vld [vmem:[%s4956_s2 + $0x30] sm:$0xff] }
  0x14   : > { %v410_v17 = vld [vmem:[%s3962_s26] sm:$0xf]  ;;  %v411_v18 = vld [vmem:[%s3962_s26 + $0x4] sm:$0xf]  ;;  %v447_v55 = vld [vmem:[%s4956_s2 + $0x28] sm:$0xff] }
  0x15   : > { %v2866_v19 = vcombine.low %v410_v17, %v411_v18  ;;  %v446_v56 = vld [vmem:[%s4956_s2 + $0x20] sm:$0xff]  ;;  %v445_v62 = vld [vmem:[%s4956_s2 + $0x18] sm:$0xff]  ;;  %v444_v63 = vld [vmem:[%s4956_s2 + $0x10] sm:$0xff] }
  0x16   : > { %v415_v17 = vld [vmem:[%s3962_s26 + $0x14] sm:$0xf]  ;;  %v416_v20 = vld [vmem:[%s3962_s26 + $0x18] sm:$0xf] }
  0x17   : > { %515 = vperm.xlu1 %3620, %v437_v5   ;;  %510 = vperm.xlu0 %3619, %v436_v6   ;;  %v443_v6 = vld [vmem:[%s4956_s2 + $0x8] sm:$0xff] }
  0x18   : > { %3234 = vmatprep.mubr.bf16.mxu0 %v2866_v19 }
  0x1b   : > { %505 = vperm.xlu1 %3620, %v435_v7   ;;  %500 = vperm.xlu0 %3619, %v434_v8   ;;  %v442_v7 = vld [vmem:[%s4956_s2] sm:$0xff] }
  0x1f   : > { %495 = vperm.xlu1 %3620, %v433_v9   ;;  %490 = vperm.xlu0 %3619, %v432_v10  }
  0x23   : > { %485 = vperm.xlu1 %3620, %v431_v11   ;;  %480 = vperm.xlu0 %3619, %v430_v12  }
  0x27   : > { %475 = vperm.xlu1 %3620, %v429_v13   ;;  %470 = vperm.xlu0 %3619, %v428_v14   ;;  %v4096_v14 = vld [vmem:[%s3962_s26 + $0x8] sm:$0xf] }
  0x28   : > { %vm1280_vm3 = vcmp.ne.bf16.partialorder %v4096_v14, 0 }
  0x2b   : > { %465 = vperm.xlu1 %3620, %v427_v15   ;;  %460 = vperm.xlu0 %3619, %v426_v16   ;;  %v4099_v15 = vld [vmem:[%s3962_s26 + $0xc] sm:$0xf]  ;;  %v414_v16 = vld [vmem:[%s3962_s26 + $0x10] sm:$0xf] }
  0x2c   : > { %v2867_v18 = vcombine.low %v4096_v14, %v4099_v15  ;;  %v2868_v19 = vcombine.low %v414_v16, %v415_v17  ;;  %vm1281_vm4 = vcmp.ne.bf16.partialorder %v4099_v15, 0 }
  0x8a   : > { %v3969_v21 = vpop.permute.xlu0 %530  ;;  %v3971_v22 = vpop.permute.xlu1 %520 }
  0x8b   : > { %v3990_v29 = vmul.f32 %v3969_v21, %v456_v23  ;;  %v3993_v30 = vmul.f32 %v3971_v22, %v454_v24  ;;  %v417_v23 = vld [vmem:[%s3962_s26 + $0x1c] sm:$0xf]  ;;  %v418_v24 = vld [vmem:[%s3962_s26 + $0x20] sm:$0xf] }
  0x8e   : > { %v3985_v27 = vpop.permute.xlu0 %535  ;;  %v3987_v28 = vpop.permute.xlu1 %525 }
  0x8f   : > { %v3996_v31 = vmul.f32 %v3985_v27, %v457_v25  ;;  %v3999_v32 = vmul.f32 %v3987_v28, %v455_v26  ;;  %v419_v25 = vld [vmem:[%s3962_s26 + $0x24] sm:$0xf]  ;;  %v2869_v26 = vcombine.low %v416_v20, %v417_v23 }
  0x91   : > { %v561_v35 = vpack.c.bf16 %v3996_v31, %v3990_v29  ;;  %v560_v38 = vpack.c.bf16 %v3999_v32, %v3993_v30 }
  0x92   : > { %v4009_v36 = vpop.permute.xlu1 %515  ;;  %v4011_v37 = vpop.permute.xlu0 %510 }
  0x93   : > { %v4016_v39 = vmul.f32 %v4009_v36, %v453_v33  ;;  %v4019_v40 = vmul.f32 %v4011_v37, %v452_v34  ;;  %3218 = vmatprep.subr.bf16.mxu0 %v561_v35  ;;  %v2870_v33 = vcombine.low %v418_v24, %v419_v25  ;;  %v420_v34 = vld [vmem:[%s3962_s26 + $0x28] sm:$0xf] }
  0x94   : > { %3219 = vmatpush3.bf16.msra.mxu0 %v561_v35  ;;  %v421_v35 = vld [vmem:[%s3962_s26 + $0x2c] sm:$0xf] }
  0x95   : > { %3220 = vmatprep.subr.bf16.mxu0 %v560_v38  ;;  %v559_v45 = vpack.c.bf16 %v4016_v39, %v4019_v40 }
  0x96   : > { %v4027_v43 = vpop.permute.xlu1 %505  ;;  %v4029_v44 = vpop.permute.xlu0 %500 }
  0x97   : > { %v4034_v46 = vmul.f32 %v4027_v43, %v451_v41  ;;  %v4037_v47 = vmul.f32 %v4029_v44, %v450_v42  ;;  %v423_v41 = vld [vmem:[%s3962_s26 + $0x34] sm:$0xf]  ;;  %v2871_v42 = vcombine.low %v420_v34, %v421_v35 }
  0x98   : > { %3221 = vmatpush3.bf16.msra.mxu0 %v560_v38  ;;  %v422_v38 = vld [vmem:[%s3962_s26 + $0x30] sm:$0xf] }
  0x99   : > { %3222 = vmatprep.subr.bf16.mxu0 %v559_v45  ;;  %v558_v52 = vpack.c.bf16 %v4034_v46, %v4037_v47 }
  0x9a   : > { %v4045_v50 = vpop.permute.xlu1 %495  ;;  %v4047_v51 = vpop.permute.xlu0 %490 }
  0x9b   : > { %v4052_v53 = vmul.f32 %v4045_v50, %v449_v48  ;;  %v4055_v54 = vmul.f32 %v4047_v51, %v448_v49  ;;  %v424_v48 = vld [vmem:[%s3962_s26 + $0x38] sm:$0xf]  ;;  %v425_v49 = vld [vmem:[%s3962_s26 + $0x3c] sm:$0xf] }
  0x9c   : > { %3223 = vmatpush3.bf16.msra.mxu0 %v559_v45  ;;  %v2872_v45 = vcombine.low %v422_v38, %v423_v41 }
  0x9d   : > { %3224 = vmatprep.subr.bf16.mxu0 %v558_v52  ;;  %v557_v59 = vpack.c.bf16 %v4052_v53, %v4055_v54 }
  0x9e   : > { %v4063_v57 = vpop.permute.xlu1 %485  ;;  %v4065_v58 = vpop.permute.xlu0 %480 }
  0x9f   : > { %v4070_v60 = vmul.f32 %v4063_v57, %v447_v55  ;;  %v4073_v61 = vmul.f32 %v4065_v58, %v446_v56  ;;  %v3630_v55 = vld [vmem:[%s4957_s3 + $0x10] sm:$0xff]   ;;  %v3631_v56 = vld [vmem:[%s4957_s3 + $0x8] sm:$0xff]  }
  0xa0   : > { %3225 = vmatpush3.bf16.msra.mxu0 %v558_v52  ;;  %v2873_v52 = vcombine.low %v424_v48, %v425_v49  ;;  %3252 = vmatprep.subr.bf16.mxu1 %v3630_v55 }
  0xa1   : > { %3226 = vmatprep.subr.bf16.mxu0 %v557_v59  ;;  %v556_v3 = vpack.c.bf16 %v4070_v60, %v4073_v61  ;;  %3253 = vmatpush3.bf16.msra.mxu1 %v3630_v55 }
  0xa2   : > { %v4081_v1 = vpop.permute.xlu1 %475  ;;  %v4083_v2 = vpop.permute.xlu0 %470  ;;  %3254 = vmatprep.subr.bf16.mxu1 %v3631_v56 }
  0xa3   : > { %v541_v4 = vmul.f32 %v4081_v1, %v445_v62  ;;  %v540_v5 = vmul.f32 %v4083_v2, %v444_v63 }
  0xa4   : > { %3227 = vmatpush3.bf16.msra.mxu0 %v557_v59  ;;  %v3632_v59 = vld [vmem:[%s4957_s3] sm:$0xff]  }
  0xa5   : > { %3228 = vmatprep.subr.bf16.mxu0 %v556_v3  ;;  %v555_v10 = vpack.c.bf16 %v541_v4, %v540_v5  ;;  %3255 = vmatpush3.bf16.msra.mxu1 %v3631_v56 }
  0xa6   : > { %v466_v8 = vpop.permute.xlu1 %465  ;;  %v461_v9 = vpop.permute.xlu0 %460  ;;  %3256 = vmatprep.subr.bf16.mxu1 %v3632_v59 }
  0xa7   : > { %v539_v11 = vmul.f32 %v466_v8, %v443_v6  ;;  %v538_v12 = vmul.f32 %v461_v9, %v442_v7 }
  0xa8   : > { %3229 = vmatpush3.bf16.msra.mxu0 %v556_v3 }
  0xa9   : > { %3230 = vmatprep.subr.bf16.mxu0 %v555_v10  ;;  %v554_v13 = vpack.c.bf16 %v539_v11, %v538_v12  ;;  %3257 = vmatpush3.bf16.msra.mxu1 %v3632_v59 }
  0xac   : > { %3231 = vmatpush3.bf16.msra.mxu0 %v555_v10 }
  0xad   : > { %3232 = vmatprep.subr.bf16.mxu0 %v554_v13 }
  0xb0   : > { %3233 = vmatpush3.bf16.msra.mxu0 %v554_v13 }
  0xb3   : > { %3235 = vmatmul.mubr.bf16.vlgmr.msra.gmra.mxu0 %v2867_v18 }
  0xb4   : > { %3238 = vmatprep.mubr.bf16.mxu0 %v2868_v19 }
  0xbb   : > { %3239 = vmatmul.mubr.bf16.gmra.mxu0 %v2869_v26 }
  0xbc   : > { %3242 = vmatprep.mubr.bf16.mxu0 %v2870_v33 }
  0xc3   : > { %3243 = vmatmul.mubr.bf16.gmra.mxu0 %v2871_v42 }
  0xc4   : > { %3246 = vmatprep.mubr.bf16.mxu0 %v2872_v45 }
  0xcb   : > { %3247 = vmatmul.mubr.bf16.gmra.mxu0 %v2873_v52 }
 0x173   : > { %v3236_v62 = vpop.f32.mrf.mxu0 }
 0x174   : > { %v653_v10 = vadd.f32 %v3236_v62, %v540_v5 }
 0x175   : > { %v644_v63 = vpop.f32.mrf.mxu0 }
 0x176   : > { %v645_v6 = vadd.f32 %v644_v63, %v538_v12  ;;  %v709_v23 = vmul.f32 %v653_v10, %v4083_v2 }
 0x177   : > { %v3237_v3 = vpop.f32.mrf.mxu0 }
 0x178   : > { %v656_v7 = vadd.f32 %v3237_v3, %v541_v4  ;;  %v707_v19 = vmul.f32 %v645_v6, %v461_v9 }
 0x179   : > { %v647_v13 = vpop.f32.mrf.mxu0 }
 0x17a   : > { %v648_v16 = vadd.f32 %v647_v13, %v539_v11  ;;  %v710_v17 = vmul.f32 %v656_v7, %v4081_v1 }
 0x17b   : > { %v3240_v18 = vpop.f32.mrf.mxu0 }
 0x17c   : > { %v708_v20 = vmul.f32 %v648_v16, %v466_v8  ;;  %v724_v26 = vpack.c.bf16 %v710_v17, %v709_v23  ;;  %v669_v4 = vadd.f32 %v3240_v18, %v4055_v54 }
 0x17d   : > { %v660_v24 = vpop.f32.mrf.mxu0 }
 0x17e   : > { %v723_v25 = vpack.c.bf16 %v708_v20, %v707_v19  ;;  %v661_v34 = vadd.f32 %v660_v24, %v4073_v61  ;;  %v713_v61 = vmul.f32 %v669_v4, %v4047_v51 }
 0x17f   : > { %v3241_v33 = vpop.f32.mrf.mxu0 }
 0x180   : > { %v672_v12 = vadd.f32 %v3241_v33, %v4052_v53  ;;  %3258 = vmatprep.mubr.msk.bf16.mxu1 %vm4966_vm0, %v723_v25  ;;  %v711_v9 = vmul.f32 %v661_v34, %v4065_v58  ;;  %v3634_v34 = vld [vmem:[%s4959_s5 + $0x30] sm:$0xff]  }
 0x181   : > { %v663_v5 = vpop.f32.mrf.mxu0  ;;  %3259 = vmatmul.mubr.msk.bf16.vlgmr.msra.gmra.mxu1 %vm4966_vm0, %v724_v26 }
 0x182   : > { %v664_v1 = vadd.f32 %v663_v5, %v4070_v60  ;;  %v714_v2 = vmul.f32 %v672_v12, %v4045_v50 }
 0x183   : > { %v3244_v8 = vpop.f32.mrf.mxu0 }
 0x184   : > { %v712_v11 = vmul.f32 %v664_v1, %v4063_v57  ;;  %v726_v38 = vpack.c.bf16 %v714_v2, %v713_v61  ;;  %v685_v60 = vadd.f32 %v3244_v8, %v4019_v40 }
 0x185   : > { %v676_v35 = vpop.f32.mrf.mxu0 }
 0x186   : > { %v725_v53 = vpack.c.bf16 %v712_v11, %v711_v9  ;;  %v677_v54 = vadd.f32 %v676_v35, %v4037_v47  ;;  %v717_v47 = vmul.f32 %v685_v60, %v4011_v37  ;;  %v3635_v11 = vld [vmem:[%s4959_s5 + $0x28] sm:$0xff]  }
 0x187   : > { %v3245_v41 = vpop.f32.mrf.mxu0 }
 0x188   : > { %v688_v42 = vadd.f32 %v3245_v41, %v4016_v39  ;;  %3262 = vmatprep.mubr.msk.bf16.mxu1 %vm4966_vm0, %v725_v53  ;;  %v715_v45 = vmul.f32 %v677_v54, %v4029_v44 }
 0x189   : > { %v679_v50 = vpop.f32.mrf.mxu0  ;;  %3263 = vmatmul.mubr.msk.bf16.gmra.mxu1 %vm4966_vm0, %v726_v38 }
 0x18a   : > { %v680_v58 = vadd.f32 %v679_v50, %v4034_v46  ;;  %v718_v57 = vmul.f32 %v688_v42, %v4009_v36  ;;  %v3636_v42 = vld [vmem:[%s4959_s5 + $0x20] sm:$0xff]  }
 0x18b   : > { %v3248_v51 = vpop.f32.mrf.mxu0 }
 0x18c   : > { %v716_v48 = vmul.f32 %v680_v58, %v4027_v43  ;;  %v728_v52 = vpack.c.bf16 %v718_v57, %v717_v47  ;;  %v701_v46 = vadd.f32 %v3248_v51, %v3990_v29  ;;  %v3633_v29 = vld [vmem:[%s4959_s5 + $0x38] sm:$0xff]  }
 0x18d   : > { %v692_v49 = vpop.f32.mrf.mxu0  ;;  %3274 = vmatprep.subr.bf16.mxu1 %v3633_v29 }
 0x18e   : > { %v727_v39 = vpack.c.bf16 %v716_v48, %v715_v45  ;;  %v693_v40 = vadd.f32 %v692_v49, %v3993_v30  ;;  %v721_v62 = vmul.f32 %v701_v46, %v3969_v21  ;;  %3275 = vmatpush3.bf16.msra.mxu1 %v3633_v29  ;;  %v3637_v48 = vld [vmem:[%s4959_s5 + $0x18] sm:$0xff]  }
 0x18f   : > { %v3249_v55 = vpop.f32.mrf.mxu0  ;;  %3276 = vmatprep.subr.bf16.mxu1 %v3634_v34 }
 0x190   : > { %v704_v56 = vadd.f32 %v3249_v55, %v3996_v31  ;;  %3266 = vmatprep.mubr.msk.bf16.mxu1 %vm4966_vm0, %v727_v39  ;;  %v719_v37 = vmul.f32 %v693_v40, %v3971_v22  ;;  %v4164_v22 = vld [vmem:[%s4958_s4] ss:$0 sm:$0xff]  ;;  %v3638_v40 = vld [vmem:[%s4959_s5 + $0x10] sm:$0xff]  }
 0x191   : > { %v695_v36 = vpop.f32.mrf.mxu0  ;;  %3267 = vmatmul.mubr.msk.bf16.gmra.mxu1 %vm4966_vm0, %v728_v52 }
 0x192   : > { %v696_v44 = vadd.f32 %v695_v36, %v3999_v32  ;;  %v722_v43 = vmul.f32 %v704_v56, %v3985_v27  ;;  %3277 = vmatpush3.bf16.msra.mxu1 %v3634_v34 }
 0x193   : > { %3278 = vmatprep.subr.bf16.mxu1 %v3635_v11 }
 0x194   : > { %v720_v59 = vmul.f32 %v696_v44, %v3987_v28  ;;  %v730_v63 = vpack.c.bf16 %v722_v43, %v721_v62  ;;  %v3639_v44 = vld [vmem:[%s4959_s5 + $0x8] sm:$0xff]  }
 0x196   : > { %v729_v30 = vpack.c.bf16 %v720_v59, %v719_v37  ;;  %3279 = vmatpush3.bf16.msra.mxu1 %v3635_v11  ;;  %v3640_v37 = vld [vmem:[%s4959_s5] sm:$0xff]   ;;  %v4270_v59 = vld [vmem:[%s4960_s6 + $0x38] sm:$0xff]  }
 0x197   : > { %3280 = vmatprep.subr.bf16.mxu1 %v3636_v42 }
 0x198   : > { %3270 = vmatprep.mubr.msk.bf16.mxu1 %vm4966_vm0, %v729_v30 }
 0x199   : > { %3271 = vmatmul.mubr.msk.bf16.gmra.mxu1 %vm4966_vm0, %v730_v63 }
 0x19a   : > { %3281 = vmatpush3.bf16.msra.mxu1 %v3636_v42 }
 0x19b   : > { %3282 = vmatprep.subr.bf16.mxu1 %v3637_v48 }
 0x19e   : > { %3283 = vmatpush3.bf16.msra.mxu1 %v3637_v48 }
 0x19f   : > { %3284 = vmatprep.subr.bf16.mxu1 %v3638_v40 }
 0x1a2   : > { %3285 = vmatpush3.bf16.msra.mxu1 %v3638_v40 }
 0x1a3   : > { %3286 = vmatprep.subr.bf16.mxu1 %v3639_v44 }
 0x1a6   : > { %3287 = vmatpush3.bf16.msra.mxu1 %v3639_v44 }
 0x1a7   : > { %3288 = vmatprep.subr.bf16.mxu1 %v3640_v37 }
 0x1aa   : > { %3289 = vmatpush3.bf16.msra.mxu1 %v3640_v37 }
 0x1ab   : > { %3338 = vmatprep.subr.bf16.mxu1 %v4270_v59 }
 0x241   : > { %v3260_v31 = vpop.f32.mrf.mxu1 }
 0x242   : > { %v4170_v32 = vadd.f32 %v3260_v31, %v4164_v22 }
 0x243   : > { %v829_v27 = vpop.f32.mrf.mxu1 }
 0x244   : > { %v4167_v21 = vadd.f32 %v4164_v22, %v829_v27  ;;  %v894_v17 = vmul.f32 %v4170_v32, %v4170_v32 }
 0x245   : > { %v3261_v28 = vpop.f32.mrf.mxu1 }
 0x246   : > { %v892_v3 = vmul.f32 %v4167_v21, %v4167_v21  ;;  %v4178_v13 = vadd.f32 %v3261_v28, %v4164_v22 }
 0x247   : > { %v832_v6 = vpop.f32.mrf.mxu1 }
 0x248   : > { %v4175_v7 = vadd.f32 %v4164_v22, %v832_v6  ;;  %908 = vadd.xlane.f32.xlu0 %v892_v3  ;;  %v895_v25 = vmul.f32 %v4178_v13, %v4178_v13 }
 0x249   : > { %v3264_v10 = vpop.f32.mrf.mxu1 }
 0x24a   : > { %v893_v16 = vmul.f32 %v4175_v7, %v4175_v7  ;;  %v4188_v23 = vadd.f32 %v3264_v10, %v4164_v22 }
 0x24b   : > { %v845_v18 = vpop.f32.mrf.mxu1 }
 0x24c   : > { %v4185_v19 = vadd.f32 %v4164_v22, %v845_v18  ;;  %910 = vadd.xlane.f32.xlu1 %v893_v16  ;;  %912 = vadd.xlane.f32.xlu0 %v894_v17  ;;  %v898_v5 = vmul.f32 %v4188_v23, %v4188_v23 }
 0x24d   : > { %v3265_v20 = vpop.f32.mrf.mxu1 }
 0x24e   : > { %v896_v24 = vmul.f32 %v4185_v19, %v4185_v19  ;;  %v4201_v4 = vadd.f32 %v3265_v20, %v4164_v22 }
 0x24f   : > { %v848_v26 = vpop.f32.mrf.mxu1 }
 0x250   : > { %v4195_v33 = vadd.f32 %v4164_v22, %v848_v26  ;;  %916 = vadd.xlane.f32.xlu1 %v896_v24  ;;  %914 = vadd.xlane.f32.xlu0 %v895_v25  ;;  %v899_v53 = vmul.f32 %v4201_v4, %v4201_v4 }
 0x251   : > { %v3268_v12 = vpop.f32.mrf.mxu1 }
 0x252   : > { %v897_v1 = vmul.f32 %v4195_v33, %v4195_v33  ;;  %v4214_v61 = vadd.f32 %v3268_v12, %v4164_v22 }
 0x253   : > { %v861_v2 = vpop.f32.mrf.mxu1 }
 0x254   : > { %v4208_v8 = vadd.f32 %v4164_v22, %v861_v2  ;;  %920 = vadd.xlane.f32.xlu1 %v898_v5  ;;  %918 = vadd.xlane.f32.xlu0 %v897_v1  ;;  %v902_v50 = vmul.f32 %v4214_v61, %v4214_v61 }
 0x255   : > { %v3269_v9 = vpop.f32.mrf.mxu1 }
 0x256   : > { %v900_v35 = vmul.f32 %v4208_v8, %v4208_v8  ;;  %v4227_v60 = vadd.f32 %v3269_v9, %v4164_v22 }
 0x257   : > { %v864_v38 = vpop.f32.mrf.mxu1 }
 0x258   : > { %v4221_v41 = vadd.f32 %v4164_v22, %v864_v38  ;;  %924 = vadd.xlane.f32.xlu1 %v900_v35  ;;  %922 = vadd.xlane.f32.xlu0 %v899_v53  ;;  %v903_v39 = vmul.f32 %v4227_v60, %v4227_v60 }
 0x259   : > { %v3272_v54 = vpop.f32.mrf.mxu1 }
 0x25a   : > { %v901_v58 = vmul.f32 %v4221_v41, %v4221_v41  ;;  %v4240_v47 = vadd.f32 %v3272_v54, %v4164_v22 }
 0x25b   : > { %v877_v57 = vpop.f32.mrf.mxu1 }
 0x25c   : > { %v4234_v51 = vadd.f32 %v4164_v22, %v877_v57  ;;  %928 = vadd.xlane.f32.xlu1 %v902_v50  ;;  %926 = vadd.xlane.f32.xlu0 %v901_v58  ;;  %v906_v46 = vmul.f32 %v4240_v47, %v4240_v47 }
 0x25d   : > { %v3273_v45 = vpop.f32.mrf.mxu1 }
 0x25e   : > { %v904_v49 = vmul.f32 %v4234_v51, %v4234_v51  ;;  %v4253_v56 = vadd.f32 %v3273_v45, %v4164_v22 }
 0x25f   : > { %v880_v52 = vpop.f32.mrf.mxu1 }
 0x260   : > { %v4247_v55 = vadd.f32 %v4164_v22, %v880_v52  ;;  %932 = vadd.xlane.f32.xlu1 %v904_v49  ;;  %930 = vadd.xlane.f32.xlu0 %v903_v39  ;;  %v907_v43 = vmul.f32 %v4253_v56, %v4253_v56  ;;  %v4285_v52 = vld [vmem:[%s4960_s6 + $0x30] sm:$0xff]  }
 0x262   : > { %v905_v36 = vmul.f32 %v4247_v55, %v4247_v55 }
 0x264   : > { %936 = vadd.xlane.f32.xlu1 %v906_v46  ;;  %934 = vadd.xlane.f32.xlu0 %v905_v36 }
 0x268   : > { %938 = vadd.xlane.f32.xlu0 %v907_v43 }
 0x2d1   : > { %v909_v62 = vpop.xlane.xlu0 %908 }
 0x2d2   : > { %v940_v30 = vmax.f32 %v909_v62, 1e-24  ;;  %v4297_v62 = vld [vmem:[%s4960_s6 + $0x28] sm:$0xff]  }
 0x2d4   : > { %3665 = vrsqrt.f32 %v940_v30 }
 0x2d5   : > { %v911_v63 = vpop.xlane.xlu1 %910  ;;  %v913_v29 = vpop.xlane.xlu0 %912 }
 0x2d6   : > { %v941_v31 = vmax.f32 %v911_v63, 1e-24  ;;  %v942_v22 = vmax.f32 %v913_v29, 1e-24 }
 0x2d8   : > { %3667 = vrsqrt.f32 %v941_v31 }
 0x2d9   : > { %v917_v27 = vpop.xlane.xlu1 %916  ;;  %v915_v28 = vpop.xlane.xlu0 %914  ;;  %3669 = vrsqrt.f32 %v942_v22  ;;  %v4307_v22 = vld [vmem:[%s4960_s6 + $0x20] sm:$0xff]  }
 0x2da   : > { %v943_v3 = vmax.f32 %v915_v28, 1e-24  ;;  %v944_v6 = vmax.f32 %v917_v27, 1e-24 }
 0x2dc   : > { %3671 = vrsqrt.f32 %v943_v3 }
 0x2dd   : > { %v921_v10 = vpop.xlane.xlu1 %920  ;;  %v919_v16 = vpop.xlane.xlu0 %918  ;;  %3673 = vrsqrt.f32 %v944_v6  ;;  %v4316_v6 = vld [vmem:[%s4960_s6 + $0x18] sm:$0xff]  }
 0x2de   : > { %v945_v17 = vmax.f32 %v919_v16, 1e-24  ;;  %v946_v18 = vmax.f32 %v921_v10, 1e-24 }
 0x2e0   : > { %3675 = vrsqrt.f32 %v945_v17 }
 0x2e1   : > { %v925_v20 = vpop.xlane.xlu1 %924  ;;  %v923_v24 = vpop.xlane.xlu0 %922  ;;  %3677 = vrsqrt.f32 %v946_v18  ;;  %v4325_v18 = vld [vmem:[%s4960_s6 + $0x10] sm:$0xff]  }
 0x2e2   : > { %v947_v25 = vmax.f32 %v923_v24, 1e-24  ;;  %v3666_v26 = vpop.eup %3665  ;;  %v948_v34 = vmax.f32 %v925_v20, 1e-24 }
 0x2e3   : > { %v972_v9 = vmul.f32 %v3666_v26, %v4167_v21 }
 0x2e4   : > { %3679 = vrsqrt.f32 %v947_v25 }
 0x2e5   : > { %v3668_v12 = vpop.eup %3667  ;;  %v929_v5 = vpop.xlane.xlu1 %928  ;;  %3681 = vrsqrt.f32 %v948_v34  ;;  %v4334_v34 = vld [vmem:[%s4960_s6 + $0x8] sm:$0xff]  }
 0x2e6   : > { %v927_v1 = vpop.xlane.xlu0 %926  ;;  %v973_v11 = vmul.f32 %v3668_v12, %v4175_v7  ;;  %v950_v35 = vmax.f32 %v929_v5, 1e-24  ;;  %v3670_v53 = vpop.eup %3669 }
 0x2e7   : > { %v949_v2 = vmax.f32 %v927_v1, 1e-24  ;;  %v974_v45 = vmul.f32 %v3670_v53, %v4170_v32 }
 0x2e8   : > { %v4275_v38 = vpack.c.bf16 %v973_v11, %v972_v9 }
 0x2e9   : > { %3683 = vrsqrt.f32 %v949_v2  ;;  %v933_v54 = vpop.xlane.xlu1 %932  ;;  %v3672_v50 = vpop.eup %3671 }
 0x2ea   : > { %v931_v42 = vpop.xlane.xlu0 %930  ;;  %3290 = vmatprep.mubr.bf16.mxu1 %v4275_v38  ;;  %3685 = vrsqrt.f32 %v950_v35  ;;  %v952_v57 = vmax.f32 %v933_v54, 1e-24  ;;  %v975_v21 = vmul.f32 %v3672_v50, %v4178_v13  ;;  %v3674_v48 = vpop.eup %3673 }
 0x2eb   : > { %v951_v58 = vmax.f32 %v931_v42, 1e-24  ;;  %v976_v32 = vmul.f32 %v3674_v48, %v4185_v19 }
 0x2ec   : > { %v4280_v39 = vpack.c.bf16 %v975_v21, %v974_v45 }
 0x2ed   : > { %3687 = vrsqrt.f32 %v951_v58  ;;  %v937_v7 = vpop.xlane.xlu1 %936  ;;  %v3676_v40 = vpop.eup %3675 }
 0x2ee   : > { %v935_v49 = vpop.xlane.xlu0 %934  ;;  %v954_v46 = vmax.f32 %v937_v7, 1e-24  ;;  %3689 = vrsqrt.f32 %v952_v57  ;;  %3291 = vmatmul.mubr.bf16.vlgmr.msra.gmra.mxu1 %v4280_v39  ;;  %v977_v13 = vmul.f32 %v3676_v40, %v4195_v33  ;;  %v3678_v44 = vpop.eup %3677 }
 0x2ef   : > { %v953_v36 = vmax.f32 %v935_v49, 1e-24  ;;  %3339 = vmatpush3.bf16.msra.mxu1 %v4270_v59  ;;  %v978_v19 = vmul.f32 %v3678_v44, %v4188_v23 }
 0x2f0   : > { %v4291_v37 = vpack.c.bf16 %v977_v13, %v976_v32  ;;  %3340 = vmatprep.subr.bf16.mxu1 %v4285_v52 }
 0x2f1   : > { %3691 = vrsqrt.f32 %v953_v36  ;;  %v3680_v30 = vpop.eup %3679 }
 0x2f2   : > { %v939_v43 = vpop.xlane.xlu0 %938  ;;  %3693 = vrsqrt.f32 %v954_v46  ;;  %3294 = vmatprep.mubr.bf16.mxu1 %v4291_v37  ;;  %v979_v33 = vmul.f32 %v3680_v30, %v4201_v4  ;;  %v3682_v29 = vpop.eup %3681 }
 0x2f3   : > { %v955_v63 = vmax.f32 %v939_v43, 1e-24  ;;  %3341 = vmatpush3.bf16.msra.mxu1 %v4285_v52  ;;  %v980_v28 = vmul.f32 %v3682_v29, %v4208_v8 }
 0x2f4   : > { %v991_v31 = vpack.c.bf16 %v979_v33, %v978_v19  ;;  %3342 = vmatprep.subr.bf16.mxu1 %v4297_v62 }
 0x2f5   : > { %3695 = vrsqrt.f32 %v955_v63 }
 0x2f6   : > { %v3684_v27 = vpop.eup %3683  ;;  %3295 = vmatmul.mubr.bf16.gmra.mxu1 %v991_v31 }
 0x2f7   : > { %v981_v23 = vmul.f32 %v3684_v27, %v4221_v41  ;;  %v3686_v3 = vpop.eup %3685  ;;  %3343 = vmatpush3.bf16.msra.mxu1 %v4297_v62 }
 0x2f8   : > { %3344 = vmatprep.subr.bf16.mxu1 %v4307_v22  ;;  %v982_v16 = vmul.f32 %v3686_v3, %v4214_v61 }
 0x2f9   : > { %v992_v4 = vpack.c.bf16 %v981_v23, %v980_v28 }
 0x2fa   : > { %v3688_v10 = vpop.eup %3687 }
 0x2fb   : > { %3298 = vmatprep.mubr.bf16.mxu1 %v992_v4  ;;  %v983_v17 = vmul.f32 %v3688_v10, %v4227_v60  ;;  %v3690_v8 = vpop.eup %3689  ;;  %3345 = vmatpush3.bf16.msra.mxu1 %v4307_v22 }
 0x2fc   : > { %3346 = vmatprep.subr.bf16.mxu1 %v4316_v6  ;;  %v984_v25 = vmul.f32 %v3690_v8, %v4234_v51 }
 0x2fd   : > { %v993_v41 = vpack.c.bf16 %v983_v17, %v982_v16 }
 0x2fe   : > { %v3692_v20 = vpop.eup %3691 }
 0x2ff   : > { %v3694_v24 = vpop.eup %3693  ;;  %3299 = vmatmul.mubr.bf16.gmra.mxu1 %v993_v41  ;;  %v985_v61 = vmul.f32 %v3692_v20, %v4247_v55  ;;  %v4343_v55 = vld [vmem:[%s4960_s6] sm:$0xff]  }
 0x300   : > { %3347 = vmatpush3.bf16.msra.mxu1 %v4316_v6  ;;  %v986_v12 = vmul.f32 %v3694_v24, %v4240_v47 }
 0x301   : > { %v994_v26 = vpack.c.bf16 %v985_v61, %v984_v25  ;;  %3348 = vmatprep.subr.bf16.mxu1 %v4325_v18 }
 0x302   : > { %v3696_v60 = vpop.eup %3695 }
 0x303   : > { %v987_v5 = vmul.f32 %v3696_v60, %v4253_v56  ;;  %3302 = vmatprep.mubr.bf16.mxu1 %v994_v26  ;;  %v3649_v60 = vld [vmem:[%s4962_s8 + $0x38] sm:$0xff]  }
 0x304   : > { %3349 = vmatpush3.bf16.msra.mxu1 %v4325_v18 }
 0x305   : > { %v995_v51 = vpack.c.bf16 %v987_v5, %v986_v12  ;;  %3350 = vmatprep.subr.bf16.mxu1 %v4334_v34  ;;  %v3651_v12 = vld [vmem:[%s4962_s8 + $0x28] sm:$0xff]   ;;  %v3652_v5 = vld [vmem:[%s4962_s8 + $0x20] sm:$0xff]  }
 0x307   : > { %3306 = vmatprep.subr.bf16.mxu0 %v995_v51  ;;  %3303 = vmatmul.mubr.bf16.gmra.mxu1 %v995_v51 }
 0x308   : > { %3307 = vmatpush3.bf16.xpose.msra.mxu0 %v995_v51  ;;  %3351 = vmatpush3.bf16.msra.mxu1 %v4334_v34 }
 0x309   : > { %3354 = vmatprep.mubr.bf16.mxu1 %v4275_v38  ;;  %3308 = vmatprep.subr.bf16.mxu0 %v994_v26 }
 0x30a   : > { %3352 = vmatprep.subr.bf16.mxu1 %v4343_v55 }
 0x30c   : > { %3353 = vmatpush3.bf16.msra.mxu1 %v4343_v55 }
 0x30f   : > { %3355 = vmatmul.mubr.bf16.vlgmr.msra.gmra.mxu1 %v4280_v39 }
 0x310   : > { %3309 = vmatpush3.bf16.xpose.msra.mxu0 %v994_v26  ;;  %3358 = vmatprep.mubr.bf16.mxu1 %v4291_v37 }
 0x311   : > { %3310 = vmatprep.subr.bf16.mxu0 %v993_v41 }
 0x317   : > { %3359 = vmatmul.mubr.bf16.gmra.mxu1 %v991_v31 }
 0x318   : > { %3311 = vmatpush3.bf16.xpose.msra.mxu0 %v993_v41  ;;  %3362 = vmatprep.mubr.bf16.mxu1 %v992_v4 }
 0x319   : > { %3312 = vmatprep.subr.bf16.mxu0 %v992_v4 }
 0x31f   : > { %3363 = vmatmul.mubr.bf16.gmra.mxu1 %v993_v41 }
 0x320   : > { %3313 = vmatpush3.bf16.xpose.msra.mxu0 %v992_v4  ;;  %3366 = vmatprep.mubr.bf16.mxu1 %v994_v26  ;;  %v3650_v26 = vld [vmem:[%s4962_s8 + $0x30] sm:$0xff]  }
 0x321   : > { %3314 = vmatprep.subr.bf16.mxu0 %v991_v31 }
 0x327   : > { %3367 = vmatmul.mubr.bf16.gmra.mxu1 %v995_v51  ;;  %v3653_v51 = vld [vmem:[%s4962_s8 + $0x18] sm:$0xff]  }
 0x328   : > { %3315 = vmatpush3.bf16.xpose.msra.mxu0 %v991_v31 }
 0x329   : > { %3316 = vmatprep.subr.bf16.mxu0 %v4291_v37 }
 0x330   : > { %3317 = vmatpush3.bf16.xpose.msra.mxu0 %v4291_v37 }
 0x331   : > { %3318 = vmatprep.subr.bf16.mxu0 %v4280_v39 }
 0x338   : > { %3319 = vmatpush3.bf16.xpose.msra.mxu0 %v4280_v39 }
 0x339   : > { %3320 = vmatprep.subr.bf16.mxu0 %v4275_v38 }
 0x340   : > { %3321 = vmatpush3.bf16.xpose.msra.mxu0 %v4275_v38 }
 0x341   : > { %3402 = vmatprep.subr.bf16.mxu0 %v3649_v60 }
 0x3ae   : > { %v3292_v47 = vpop.f32.mrf.mxu1 }
 0x3b0   : > { %v1094_v56 = vpop.f32.mrf.mxu1 }
 0x3b2   : > { %v3293_v1 = vpop.f32.mrf.mxu1 }
 0x3b3   : > { %v1158_v11 = vpack.c.bf16 %v3293_v1, %v3292_v47 }
 0x3b4   : > { %v1097_v2 = vpop.f32.mrf.mxu1 }
 0x3b5   : > { %v1157_v9 = vpack.c.bf16 %v1097_v2, %v1094_v56 }
 0x3b6   : > { %v3296_v35 = vpop.f32.mrf.mxu1 }
 0x3b7   : > { %3322 = vmatprep.mubr.bf16.mxu0 %v1157_v9 }
 0x3b8   : > { %v1110_v53 = vpop.f32.mrf.mxu1  ;;  %3323 = vmatmul.mubr.bf16.vlgmr.msra.gmra.mxu0 %v1158_v11 }
 0x3b9   : > { %3403 = vmatpush3.bf16.msra.mxu0 %v3649_v60 }
 0x3ba   : > { %v3297_v54 = vpop.f32.mrf.mxu1  ;;  %3404 = vmatprep.subr.bf16.mxu0 %v3650_v26 }
 0x3bb   : > { %v1160_v58 = vpack.c.bf16 %v3297_v54, %v3296_v35 }
 0x3bc   : > { %v1113_v42 = vpop.f32.mrf.mxu1 }
 0x3bd   : > { %v1159_v50 = vpack.c.bf16 %v1113_v42, %v1110_v53  ;;  %3405 = vmatpush3.bf16.msra.mxu0 %v3650_v26 }
 0x3be   : > { %3406 = vmatprep.subr.bf16.mxu0 %v3651_v12 }
 0x3bf   : > { %v3300_v57 = vpop.f32.mrf.mxu1  ;;  %3326 = vmatprep.mubr.bf16.mxu0 %v1159_v50 }
 0x3c0   : > { %3327 = vmatmul.mubr.bf16.gmra.mxu0 %v1160_v58 }
 0x3c1   : > { %v1126_v45 = vpop.f32.mrf.mxu1  ;;  %3407 = vmatpush3.bf16.msra.mxu0 %v3651_v12 }
 0x3c2   : > { %3408 = vmatprep.subr.bf16.mxu0 %v3652_v5 }
 0x3c3   : > { %v3301_v21 = vpop.f32.mrf.mxu1 }
 0x3c4   : > { %v1162_v7 = vpack.c.bf16 %v3301_v21, %v3300_v57 }
 0x3c5   : > { %v1129_v38 = vpop.f32.mrf.mxu1  ;;  %3409 = vmatpush3.bf16.msra.mxu0 %v3652_v5 }
 0x3c6   : > { %v1161_v48 = vpack.c.bf16 %v1129_v38, %v1126_v45  ;;  %3410 = vmatprep.subr.bf16.mxu0 %v3653_v51 }
 0x3c7   : > { %v3304_v49 = vpop.f32.mrf.mxu1 }
 0x3c8   : > { %3330 = vmatprep.mubr.bf16.mxu0 %v1161_v48 }
 0x3c9   : > { %v1142_v39 = vpop.f32.mrf.mxu1  ;;  %3331 = vmatmul.mubr.bf16.gmra.mxu0 %v1162_v7 }
 0x3ca   : > { %3411 = vmatpush3.bf16.msra.mxu0 %v3653_v51 }
 0x3cb   : > { %v3305_v40 = vpop.f32.mrf.mxu1 }
 0x3cc   : > { %v1164_v32 = vpack.c.bf16 %v3305_v40, %v3304_v49 }
 0x3cd   : > { %v1145_v46 = vpop.f32.mrf.mxu1 }
 0x3ce   : > { %v1163_v36 = vpack.c.bf16 %v1145_v46, %v1142_v39 }
 0x3cf   : > { %v3356_v13 = vpop.f32.mrf.mxu1 }
 0x3d0   : > { %3334 = vmatprep.mubr.bf16.mxu0 %v1163_v36 }
 0x3d1   : > { %3335 = vmatmul.mubr.bf16.gmra.mxu0 %v1164_v32  ;;  %v1560_v44 = vpop.f32.mrf.mxu1 }
 0x3d3   : > { %v3357_v43 = vpop.f32.mrf.mxu1 }
 0x3d4   : > { %v1624_v25 = vpack.c.bf16 %v3357_v43, %v3356_v13 }
 0x3d5   : > { %v1563_v37 = vpop.f32.mrf.mxu1 }
 0x3d6   : > { %v1623_v61 = vpack.c.bf16 %v1563_v37, %v1560_v44 }
 0x3d7   : > { %v3360_v30 = vpop.f32.mrf.mxu1 }
 0x3d9   : > { %v1576_v63 = vpop.f32.mrf.mxu1 }
 0x3db   : > { %v3361_v19 = vpop.f32.mrf.mxu1 }
 0x3dc   : > { %v1626_v20 = vpack.c.bf16 %v3361_v19, %v3360_v30 }
 0x3dd   : > { %v1579_v33 = vpop.f32.mrf.mxu1 }
 0x3de   : > { %v1625_v24 = vpack.c.bf16 %v1579_v33, %v1576_v63 }
 0x3df   : > { %v3364_v29 = vpop.f32.mrf.mxu1 }
 0x3e1   : > { %v1592_v31 = vpop.f32.mrf.mxu1 }
 0x3e3   : > { %v3365_v27 = vpop.f32.mrf.mxu1 }
 0x3e4   : > { %v1628_v8 = vpack.c.bf16 %v3365_v27, %v3364_v29 }
 0x3e5   : > { %v1595_v28 = vpop.f32.mrf.mxu1 }
 0x3e6   : > { %v1627_v41 = vpack.c.bf16 %v1595_v28, %v1592_v31 }
 0x3e7   : > { %v3368_v23 = vpop.f32.mrf.mxu1 }
 0x3e9   : > { %v1608_v3 = vpop.f32.mrf.mxu1 }
 0x3eb   : > { %v3369_v4 = vpop.f32.mrf.mxu1 }
 0x3ec   : > { %v1630_v10 = vpack.c.bf16 %v3369_v4, %v3368_v23 }
 0x3ed   : > { %v1611_v16 = vpop.f32.mrf.mxu1 }
 0x3ee   : > { %v1629_v17 = vpack.c.bf16 %v1611_v16, %v1608_v3  ;;  %3370 = vmatprep.subr.bf16.mxu1 %v1630_v10 }
 0x3ef   : > { %3371 = vmatpush3.bf16.msra.mxu1 %v1630_v10 }
 0x3f0   : > { %3372 = vmatprep.subr.bf16.mxu1 %v1629_v17 }
 0x3f3   : > { %3373 = vmatpush3.bf16.msra.mxu1 %v1629_v17 }
 0x3f4   : > { %3374 = vmatprep.subr.bf16.mxu1 %v1628_v8 }
 0x3f7   : > { %3375 = vmatpush3.bf16.msra.mxu1 %v1628_v8  ;;  %v3857_v8 = vld [vmem:[%s3962_s26] sm:$0xf] }
 0x3f8   : > { %3376 = vmatprep.subr.bf16.mxu1 %v1627_v41  ;;  %vm1278_vm1 = vcmp.ne.bf16.partialorder %v3857_v8, 0 }
 0x3fb   : > { %3377 = vmatpush3.bf16.msra.mxu1 %v1627_v41  ;;  %v3858_v41 = vld [vmem:[%s3962_s26 + $0x4] sm:$0xf] }
 0x3fc   : > { %3378 = vmatprep.subr.bf16.mxu1 %v1626_v20  ;;  %vm1279_vm2 = vcmp.ne.bf16.partialorder %v3858_v41, 0 }
 0x3ff   : > { %3379 = vmatpush3.bf16.msra.mxu1 %v1626_v20 }
 0x400   : > { %3380 = vmatprep.subr.bf16.mxu1 %v1625_v24 }
 0x403   : > { %3381 = vmatpush3.bf16.msra.mxu1 %v1625_v24 }
 0x404   : > { %3382 = vmatprep.subr.bf16.mxu1 %v1624_v25 }
 0x407   : > { %3383 = vmatpush3.bf16.msra.mxu1 %v1624_v25 }
 0x408   : > { %3384 = vmatprep.subr.bf16.mxu1 %v1623_v61 }
 0x40b   : > { %3385 = vmatpush3.bf16.msra.mxu1 %v1623_v61 }
 0x478   : > { %v3324_v47 = vpop.f32.mrf.mxu0 }
 0x479   : > { %v2897_v56 = vmul.f32 -0.088388346, %v3324_v47 }
 0x47a   : > { %v1199_v1 = vpop.f32.mrf.mxu0 }
 0x47b   : > { %v1314_v2 = vmul.f32 1.442695, %v2897_v56  ;;  %v2895_v9 = vmul.f32 -0.088388346, %v1199_v1  ;;  %v1390_v56 = vsel %vm1278_vm1, 65537, %v3879_v0  ;;  %v1391_v1 = vsel %vm1279_vm2, 65537, %v3879_v0 }
 0x47c   : > { %v3325_v11 = vpop.f32.mrf.mxu0 }
 0x47d   : > { %3697 = vpow2.f32 %v1314_v2  ;;  %v1310_v35 = vmul.f32 1.442695, %v2895_v9  ;;  %v2898_v53 = vmul.f32 -0.088388346, %v3325_v11 }
 0x47e   : > { %v1202_v54 = vpop.f32.mrf.mxu0 }
 0x47f   : > { %3699 = vpow2.f32 %v1310_v35  ;;  %v1316_v42 = vmul.f32 1.442695, %v2898_v53  ;;  %v2896_v50 = vmul.f32 -0.088388346, %v1202_v54  ;;  %v1392_v54 = vsel %vm1280_vm3, 65537, %v3879_v0 }
 0x480   : > { %v3328_v58 = vpop.f32.mrf.mxu0 }
 0x481   : > { %3701 = vpow2.f32 %v1316_v42  ;;  %v1312_v57 = vmul.f32 1.442695, %v2896_v50  ;;  %v2901_v45 = vmul.f32 -0.088388346, %v3328_v58  ;;  %v1393_v42 = vsel %vm1281_vm4, 65537, %v3879_v0 }
 0x482   : > { %v1215_v21 = vpop.f32.mrf.mxu0 }
 0x483   : > { %3703 = vpow2.f32 %v1312_v57  ;;  %v1322_v38 = vmul.f32 1.442695, %v2901_v45  ;;  %v2899_v48 = vmul.f32 -0.088388346, %v1215_v21 }
 0x484   : > { %v3329_v7 = vpop.f32.mrf.mxu0 }
 0x485   : > { %3705 = vpow2.f32 %v1322_v38  ;;  %v1318_v49 = vmul.f32 1.442695, %v2899_v48  ;;  %v2902_v39 = vmul.f32 -0.088388346, %v3329_v7  ;;  %v1406_v38 = vunpack.c.l.b16 %v1390_v56 }
 0x486   : > { %v1218_v40 = vpop.f32.mrf.mxu0  ;;  %v1407_v48 = vunpack.c.l.b16 %v1391_v1  ;;  %v1408_v7 = vunpack.c.l.b16 %v1392_v54  ;;  %v3864_v1 = vld [vmem:[%s3962_s26 + $0x24] sm:$0xf] }
 0x487   : > { %3707 = vpow2.f32 %v1318_v49  ;;  %v1324_v46 = vmul.f32 1.442695, %v2902_v39  ;;  %v2900_v36 = vmul.f32 -0.088388346, %v1218_v40  ;;  %v1409_v39 = vunpack.c.l.b16 %v1393_v42  ;;  %v3859_v40 = vld [vmem:[%s3962_s26 + $0x10] sm:$0xf] }
 0x488   : > { %vm1282_vm5 = vcmp.ne.bf16.partialorder %v3859_v40, 0  ;;  %vm4390_vm9 = vcmp.ne.s32.totalorder %v1406_v38, 0  ;;  %vm4394_vm10 = vcmp.ne.s32.totalorder %v1407_v48, 0  ;;  %vm4398_vm11 = vcmp.ne.s32.totalorder %v1408_v7, 0  ;;  %v4871_v7 = vld [vmem:[%s4964_s10] ss:$0 sm:$0xff] }
 0x489   : > { %v3332_v32 = vpop.f32.mrf.mxu0  ;;  %3709 = vpow2.f32 %v1324_v46  ;;  %v1320_v13 = vmul.f32 1.442695, %v2900_v36  ;;  %v3860_v36 = vld [vmem:[%s3962_s26 + $0x14] sm:$0xf]  ;;  %vm4404_vm12 = vcmp.ne.s32.totalorder %v1409_v39, 0  ;;  %vm4416_vm13 = vmpackc.low %vm4394_vm10, %vm4390_vm9  ;;  %vm1287_vm1 = vcmp.ne.bf16.partialorder %v3864_v1, 0 }
 0x48a   : > { %v2905_v44 = vmul.f32 -0.088388346, %v3332_v32  ;;  %v3698_v43 = vpop.eup %3697  ;;  %vm1283_vm6 = vcmp.ne.bf16.partialorder %v3860_v36, 0  ;;  %v3861_v32 = vld [vmem:[%s3962_s26 + $0x18] sm:$0xf]  ;;  %vm4424_vm14 = vmpackc.low %vm4404_vm12, %vm4398_vm11 }
 0x48b   : > { %v1231_v37 = vpop.f32.mrf.mxu0  ;;  %v1344_v30 = vadd.f32 1.0, %v3698_v43  ;;  %3711 = vpow2.f32 %v1320_v13  ;;  %vm1284_vm7 = vcmp.ne.bf16.partialorder %v3861_v32, 0 }
 0x48c   : > { %v1330_v63 = vmul.f32 1.442695, %v2905_v44  ;;  %v2903_v19 = vmul.f32 -0.088388346, %v1231_v37  ;;  %v3700_v33 = vpop.eup %3699  ;;  %v3862_v44 = vld [vmem:[%s3962_s26 + $0x1c] sm:$0xf] }
 0x48d   : > { %v3333_v29 = vpop.f32.mrf.mxu0  ;;  %3713 = vrcp.f32 %v1344_v30  ;;  %v1342_v31 = vadd.f32 1.0, %v3700_v33  ;;  %vm1285_vm8 = vcmp.ne.bf16.partialorder %v3862_v44, 0  ;;  %v4975_v37 = vmov 0 }
 0x48e   : > { %v1326_v27 = vmul.f32 1.442695, %v2903_v19  ;;  %v2906_v28 = vmul.f32 -0.088388346, %v3333_v29  ;;  %v3702_v23 = vpop.eup %3701  ;;  %3715 = vpow2.f32 %v1330_v63  ;;  %v4976_v37 = vsel %vm4390_vm9, 4294967295, %v4975_v37 }
 0x48f   : > { %v1234_v3 = vpop.f32.mrf.mxu0  ;;  %3717 = vrcp.f32 %v1342_v31  ;;  %v1345_v4 = vadd.f32 1.0, %v3702_v23  ;;  %v4977_v30 = vmov 0  ;;  %v4979_v63 = vmov 0 }
 0x490   : > { %v1332_v10 = vmul.f32 1.442695, %v2906_v28  ;;  %v2904_v16 = vmul.f32 -0.088388346, %v1234_v3  ;;  %v3704_v17 = vpop.eup %3703  ;;  %3719 = vpow2.f32 %v1326_v27  ;;  %v4978_v30 = vsel %vm4394_vm10, 4294967295, %v4977_v30 }
 0x491   : > { %v3336_v20 = vpop.f32.mrf.mxu0  ;;  %3721 = vrcp.f32 %v1345_v4  ;;  %v1343_v24 = vadd.f32 1.0, %v3704_v17  ;;  %v4980_v63 = vsel %vm4398_vm11, 4294967295, %v4979_v63  ;;  %v1394_v19 = vsel %vm1282_vm5, 65537, %v3879_v0 }
 0x492   : > { %v1328_v25 = vmul.f32 1.442695, %v2904_v16  ;;  %v2909_v61 = vmul.f32 -0.088388346, %v3336_v20  ;;  %v3706_v60 = vpop.eup %3705  ;;  %3723 = vpow2.f32 %v1332_v10  ;;  %v4981_v29 = vmov 0 }
 0x493   : > { %v1247_v26 = vpop.f32.mrf.mxu0  ;;  %3725 = vrcp.f32 %v1343_v24  ;;  %v1348_v12 = vadd.f32 1.0, %v3706_v60  ;;  %v4982_v29 = vsel %vm4404_vm12, 4294967295, %v4981_v29  ;;  %v1395_v27 = vsel %vm1283_vm6, 65537, %v3879_v0 }
 0x494   : > { %v1338_v5 = vmul.f32 1.442695, %v2909_v61  ;;  %v2907_v51 = vmul.f32 -0.088388346, %v1247_v26  ;;  %v3708_v47 = vpop.eup %3707  ;;  %3727 = vpow2.f32 %v1328_v25  ;;  %v1396_v28 = vsel %vm1284_vm7, 65537, %v3879_v0 }
 0x495   : > { %v3337_v2 = vpop.f32.mrf.mxu0  ;;  %3729 = vrcp.f32 %v1348_v12  ;;  %v1346_v9 = vadd.f32 1.0, %v3708_v47  ;;  %v1397_v3 = vsel %vm1285_vm8, 65537, %v3879_v0  ;;  %v1410_v17 = vunpack.c.l.b16 %v1394_v19  ;;  %v3863_v47 = vld [vmem:[%s3962_s26 + $0x20] sm:$0xf] }
 0x496   : > { %v1334_v11 = vmul.f32 1.442695, %v2907_v51  ;;  %v2910_v35 = vmul.f32 -0.088388346, %v3337_v2  ;;  %v3710_v53 = vpop.eup %3709  ;;  %3731 = vpow2.f32 %v1338_v5  ;;  %v1411_v25 = vunpack.c.l.b16 %v1395_v27  ;;  %v3865_v2 = vld [vmem:[%s3962_s26 + $0x28] sm:$0xf] }
 0x497   : > { %v1250_v50 = vpop.f32.mrf.mxu0  ;;  %3733 = vrcp.f32 %v1346_v9  ;;  %v1349_v58 = vadd.f32 1.0, %v3710_v53  ;;  %v1412_v61 = vunpack.c.l.b16 %v1396_v28  ;;  %v1413_v5 = vunpack.c.l.b16 %v1397_v3  ;;  %v3869_v27 = vld [vmem:[%s3962_s26 + $0x38] sm:$0xf]  ;;  %v3870_v28 = vld [vmem:[%s3962_s26 + $0x3c] sm:$0xf] }
 0x498   : > { %v1340_v57 = vmul.f32 1.442695, %v2910_v35  ;;  %v2908_v45 = vmul.f32 -0.088388346, %v1250_v50  ;;  %v3712_v21 = vpop.eup %3711  ;;  %3735 = vpow2.f32 %v1334_v11  ;;  %vm1286_vm15 = vcmp.ne.bf16.partialorder %v3863_v47, 0 }
 0x499   : > { %3737 = vrcp.f32 %v1349_v58  ;;  %v1347_v14 = vadd.f32 1.0, %v3712_v21  ;;  %vm1288_vm2 = vcmp.ne.bf16.partialorder %v3865_v2, 0  ;;  %v3866_v11 = vld [vmem:[%s3962_s26 + $0x2c] sm:$0xf]  ;;  %vm4436_vm4 = vcmp.ne.s32.totalorder %v1410_v17, 0 }
 0x49a   : > { %v1336_v49 = vmul.f32 1.442695, %v2908_v45  ;;  %v3714_v15 = vpop.eup %3713  ;;  %3739 = vpow2.f32 %v1340_v57  ;;  %vm1289_vm3 = vcmp.ne.bf16.partialorder %v3866_v11, 0  ;;  %v4987_v35 = vmov 0 }
 0x49b   : > { %v3716_v46 = vpop.eup %3715  ;;  %3741 = vrcp.f32 %v1347_v14  ;;  %v4988_v35 = vsel %vm4436_vm4, 4294967295, %v4987_v35  ;;  %vm4440_vm5 = vcmp.ne.s32.totalorder %v1411_v25, 0  ;;  %v4989_v53 = vmov 0 }
 0x49c   : > { %v3718_v13 = vpop.eup %3717  ;;  %3743 = vpow2.f32 %v1336_v49  ;;  %v1352_v41 = vadd.f32 1.0, %v3716_v46  ;;  %v4990_v53 = vsel %vm4440_vm5, 4294967295, %v4989_v53  ;;  %vm4444_vm6 = vcmp.ne.s32.totalorder %v1412_v61, 0  ;;  %vm4460_vm8 = vmpackc.low %vm4440_vm5, %vm4436_vm4 }
 0x49d   : > { %v3720_v43 = vpop.eup %3719  ;;  %vm4448_vm7 = vcmp.ne.s32.totalorder %v1413_v5, 0  ;;  %v4993_v58 = vmov 0  ;;  %v1398_v57 = vsel %vm1286_vm15, 65537, %v3879_v0  ;;  %v1399_v21 = vsel %vm1287_vm1, 65537, %v3879_v0 }
 0x49e   : > { %v3722_v33 = vpop.eup %3721  ;;  %v1350_v31 = vadd.f32 1.0, %v3720_v43  ;;  %v4994_v58 = vsel %vm4448_vm7, 4294967295, %v4993_v58  ;;  %v1400_v14 = vsel %vm1288_vm2, 65537, %v3879_v0  ;;  %v1401_v49 = vsel %vm1289_vm3, 65537, %v3879_v0  ;;  %vm4471_vm15 = vmpackc.low %vm4448_vm7, %vm4444_vm6 }
 0x49f   : > { %v3724_v23 = vpop.eup %3723  ;;  %v2924_v12 = vpack.c.bf16 %v3722_v33, %v3714_v15  ;;  %v1414_v36 = vunpack.c.l.b16 %v1398_v57  ;;  %v1415_v44 = vunpack.c.l.b16 %v1399_v21  ;;  %v1416_v43 = vunpack.c.l.b16 %v1400_v14  ;;  %v3867_v33 = vld [vmem:[%s3962_s26 + $0x30] sm:$0xf] }
 0x4a0   : > { %v3726_v4 = vpop.eup %3725  ;;  %v1353_v10 = vadd.f32 1.0, %v3724_v23  ;;  %3745 = vrcp.f32 %v1350_v31  ;;  %v1417_v19 = vunpack.c.l.b16 %v1401_v49  ;;  %vm1290_vm1 = vcmp.ne.bf16.partialorder %v3867_v33, 0  ;;  %v3868_v31 = vld [vmem:[%s3962_s26 + $0x34] sm:$0xf] }
 0x4a1   : > { %v3728_v8 = vpop.eup %3727  ;;  %v2921_v20 = vpack.c.bf16 %v3726_v4, %v3718_v13  ;;  %vm1291_vm2 = vcmp.ne.bf16.partialorder %v3868_v31, 0  ;;  %vm1292_vm3 = vcmp.ne.bf16.partialorder %v3869_v27, 0  ;;  %vm1293_vm0 = vcmp.ne.bf16.partialorder %v3870_v28, 0 }
 0x4a2   : > { %v3730_v60 = vpop.eup %3729  ;;  %v1351_v26 = vadd.f32 1.0, %v3728_v8  ;;  %3747 = vrcp.f32 %v1353_v10  ;;  %vm4483_vm10 = vcmp.ne.s32.totalorder %v1414_v36, 0  ;;  %vm4487_vm12 = vcmp.ne.s32.totalorder %v1415_v44, 0  ;;  %v3656_v36 = vld [vmem:[%s4962_s8] sm:$0xff]  }
 0x4a3   : > { %v3732_v51 = vpop.eup %3731  ;;  %3386 = vmatprep.mubr.msk.bf16.mxu1 %vm4416_vm13, %v2921_v20  ;;  %v5001_v3 = vmov 0  ;;  %vm4491_vm9 = vcmp.ne.s32.totalorder %v1416_v43, 0  ;;  %vm4495_vm5 = vcmp.ne.s32.totalorder %v1417_v19, 0  ;;  %v1402_v8 = vsel %vm1290_vm1, 65537, %v3879_v0  ;;  %vm4507_vm11 = vmpackc.low %vm4487_vm12, %vm4483_vm10  ;;  %v4572_v44 = vld [vmem:[%s4961_s7] ss:$0 sm:$0xff] }
 0x4a4   : > { %v3734_v56 = vpop.eup %3733  ;;  %3749 = vrcp.f32 %v1351_v26  ;;  %3387 = vmatmul.mubr.msk.bf16.vlgmr.msra.gmra.mxu1 %vm4424_vm14, %v2924_v12  ;;  %v1356_v39 = vadd.f32 1.0, %v3732_v51  ;;  %v5002_v3 = vsel %vm4487_vm12, 4294967295, %v5001_v3  ;;  %v1404_v25 = vsel %vm1292_vm3, 65537, %v3879_v0  ;;  %vm4515_vm1 = vmpackc.low %vm4495_vm5, %vm4491_vm9 }
 0x4a5   : > { %v3736_v9 = vpop.eup %3735  ;;  %3751 = vrcp.f32 %v1352_v41  ;;  %v1403_v41 = vsel %vm1291_vm2, 65537, %v3879_v0  ;;  %v1405_v61 = vsel %vm1293_vm0, 65537, %v3879_v0  ;;  %v1418_v0 = vunpack.c.l.b16 %v1402_v8 }
 0x4a6   : > { %v3738_v54 = vpop.eup %3737  ;;  %v1354_v42 = vadd.f32 1.0, %v3736_v9  ;;  %v1419_v47 = vunpack.c.l.b16 %v1403_v41  ;;  %v1420_v1 = vunpack.c.l.b16 %v1404_v25  ;;  %v1421_v2 = vunpack.c.l.b16 %v1405_v61 }
 0x4a7   : > { %v3740_v45 = vpop.eup %3739  ;;  %v2930_v13 = vpack.c.bf16 %v3738_v54, %v3730_v60  ;;  %vm4523_vm0 = vcmp.ne.s32.totalorder %v1418_v0, 0 }
 0x4a8   : > { %v3742_v38 = vpop.eup %3741  ;;  %v1357_v48 = vadd.f32 1.0, %v3740_v45  ;;  %3753 = vrcp.f32 %v1354_v42  ;;  %vm4527_vm2 = vcmp.ne.s32.totalorder %v1419_v47, 0  ;;  %vm4531_vm3 = vcmp.ne.s32.totalorder %v1420_v1, 0 }
 0x4a9   : > { %v3744_v15 = vpop.eup %3743  ;;  %v2927_v40 = vpack.c.bf16 %v3742_v38, %v3734_v56  ;;  %vm4535_vm7 = vcmp.ne.s32.totalorder %v1421_v2, 0  ;;  %vm4543_vm4 = vmpackc.low %vm4527_vm2, %vm4523_vm0 }
 0x4aa   : > { %v1355_v32 = vadd.f32 1.0, %v3744_v15  ;;  %3755 = vrcp.f32 %v1357_v48  ;;  %vm4551_vm12 = vmpackc.low %vm4535_vm7, %vm4531_vm3 }
 0x4ab   : > { %3390 = vmatprep.mubr.msk.bf16.mxu1 %vm4460_vm8, %v2927_v40  ;;  %v3655_v40 = vld [vmem:[%s4962_s8 + $0x8] sm:$0xff]  }
 0x4ac   : > { %3757 = vrcp.f32 %v1355_v32  ;;  %3391 = vmatmul.mubr.msk.bf16.gmra.mxu1 %vm4471_vm15, %v2930_v13 }
 0x4ad   : > { %3759 = vrcp.f32 %v1356_v39  ;;  %v3746_v4 = vpop.eup %3745  ;;  %v3654_v39 = vld [vmem:[%s4962_s8 + $0x10] sm:$0xff]  }
 0x4ae   : > { %3412 = vmatprep.subr.bf16.mxu0 %v3654_v39 }
 0x4af   : > { %v3748_v20 = vpop.eup %3747  ;;  %3413 = vmatpush3.bf16.msra.mxu0 %v3654_v39 }
 0x4b0   : > { %3414 = vmatprep.subr.bf16.mxu0 %v3655_v40 }
 0x4b1   : > { %v3750_v60 = vpop.eup %3749 }
 0x4b2   : > { %v3752_v12 = vpop.eup %3751  ;;  %v2933_v5 = vpack.c.bf16 %v3750_v60, %v3746_v4 }
 0x4b3   : > { %v2936_v56 = vpack.c.bf16 %v3748_v20, %v3752_v12  ;;  %3415 = vmatpush3.bf16.msra.mxu0 %v3655_v40 }
 0x4b4   : > { %3394 = vmatprep.mubr.msk.bf16.mxu1 %vm4507_vm11, %v2933_v5  ;;  %3416 = vmatprep.subr.bf16.mxu0 %v3656_v36 }
 0x4b5   : > { %3395 = vmatmul.mubr.msk.bf16.gmra.mxu1 %vm4515_vm1, %v2936_v56  ;;  %v3754_v54 = vpop.eup %3753 }
 0x4b7   : > { %v3756_v45 = vpop.eup %3755  ;;  %3417 = vmatpush3.bf16.msra.mxu0 %v3656_v36 }
 0x4b8   : > { %3466 = vmatprep.subr.bf16.mxu0 %v4270_v59 }
 0x4b9   : > { %v3758_v21 = vpop.eup %3757 }
 0x4ba   : > { %v3760_v48 = vpop.eup %3759  ;;  %v2939_v14 = vpack.c.bf16 %v3758_v21, %v3754_v54 }
 0x4bb   : > { %v2942_v15 = vpack.c.bf16 %v3756_v45, %v3760_v48 }
 0x4bc   : > { %3398 = vmatprep.mubr.msk.bf16.mxu1 %vm4543_vm4, %v2939_v14 }
 0x4bd   : > { %3399 = vmatmul.mubr.msk.bf16.gmra.mxu1 %vm4551_vm12, %v2942_v15 }
 0x564   : > { %v3388_v32 = vpop.f32.mrf.mxu1 }
 0x565   : > { %v1681_v31 = vadd.f32 %v3388_v32, %v4572_v44 }
 0x566   : > { %v1672_v13 = vpop.f32.mrf.mxu1 }
 0x567   : > { %v1673_v19 = vadd.f32 %v4572_v44, %v1672_v13  ;;  %v1737_v25 = vmax.f32 %v1681_v31, 0.0 }
 0x568   : > { %v3389_v43 = vpop.f32.mrf.mxu1 }
 0x569   : > { %v1684_v33 = vadd.f32 %v3389_v43, %v4572_v44  ;;  %v1735_v41 = vmax.f32 %v1673_v19, 0.0 }
 0x56a   : > { %v1675_v27 = vpop.f32.mrf.mxu1 }
 0x56b   : > { %v1676_v28 = vadd.f32 %v4572_v44, %v1675_v27  ;;  %v1738_v4 = vmax.f32 %v1684_v33, 0.0 }
 0x56c   : > { %v3392_v8 = vpop.f32.mrf.mxu1 }
 0x56d   : > { %v1736_v20 = vmax.f32 %v1676_v28, 0.0  ;;  %v4580_v12 = vpack.c.bf16 %v1738_v4, %v1737_v25  ;;  %v1697_v56 = vadd.f32 %v3392_v8, %v4572_v44 }
 0x56e   : > { %v1688_v61 = vpop.f32.mrf.mxu1 }
 0x56f   : > { %v4578_v60 = vpack.c.bf16 %v1736_v20, %v1735_v41  ;;  %v1689_v0 = vadd.f32 %v4572_v44, %v1688_v61  ;;  %v1741_v14 = vmax.f32 %v1697_v56, 0.0 }
 0x570   : > { %v3393_v5 = vpop.f32.mrf.mxu1 }
 0x571   : > { %v1700_v47 = vadd.f32 %v3393_v5, %v4572_v44  ;;  %3418 = vmatprep.mubr.bf16.mxu0 %v4578_v60  ;;  %v1739_v45 = vmax.f32 %v1689_v0, 0.0 }
 0x572   : > { %v1691_v1 = vpop.f32.mrf.mxu1  ;;  %3419 = vmatmul.mubr.bf16.vlgmr.msra.gmra.mxu0 %v4580_v12 }
 0x573   : > { %v1692_v2 = vadd.f32 %v4572_v44, %v1691_v1  ;;  %3467 = vmatpush3.bf16.msra.mxu0 %v4270_v59  ;;  %v1742_v54 = vmax.f32 %v1700_v47, 0.0 }
 0x574   : > { %3468 = vmatprep.subr.bf16.mxu0 %v4285_v52 }
 0x575   : > { %v1740_v21 = vmax.f32 %v1692_v2, 0.0  ;;  %v3396_v48 = vpop.f32.mrf.mxu1  ;;  %v1754_v40 = vpack.c.bf16 %v1742_v54, %v1741_v14 }
 0x576   : > { %v1713_v13 = vadd.f32 %v3396_v48, %v4572_v44 }
 0x577   : > { %v4590_v15 = vpack.c.bf16 %v1740_v21, %v1739_v45  ;;  %v1704_v39 = vpop.f32.mrf.mxu1  ;;  %3469 = vmatpush3.bf16.msra.mxu0 %v4285_v52 }
 0x578   : > { %3470 = vmatprep.subr.bf16.mxu0 %v4297_v62  ;;  %v1705_v59 = vadd.f32 %v4572_v44, %v1704_v39  ;;  %v1745_v28 = vmax.f32 %v1713_v13, 0.0 }
 0x579   : > { %v3397_v36 = vpop.f32.mrf.mxu1  ;;  %3422 = vmatprep.mubr.bf16.mxu0 %v4590_v15 }
 0x57a   : > { %v1716_v32 = vadd.f32 %v3397_v36, %v4572_v44  ;;  %3423 = vmatmul.mubr.bf16.gmra.mxu0 %v1754_v40  ;;  %v1743_v31 = vmax.f32 %v1705_v59, 0.0 }
 0x57b   : > { %v1707_v43 = vpop.f32.mrf.mxu1  ;;  %3471 = vmatpush3.bf16.msra.mxu0 %v4297_v62 }
 0x57c   : > { %v1708_v19 = vadd.f32 %v4572_v44, %v1707_v43  ;;  %3472 = vmatprep.subr.bf16.mxu0 %v4307_v22  ;;  %v1746_v52 = vmax.f32 %v1716_v32, 0.0 }
 0x57d   : > { %v3400_v33 = vpop.f32.mrf.mxu1 }
 0x57e   : > { %v1744_v27 = vmax.f32 %v1708_v19, 0.0  ;;  %v1729_v41 = vadd.f32 %v3400_v33, %v4572_v44  ;;  %v1756_v20 = vpack.c.bf16 %v1746_v52, %v1745_v28 }
 0x57f   : > { %v1720_v4 = vpop.f32.mrf.mxu1  ;;  %3473 = vmatpush3.bf16.msra.mxu0 %v4307_v22 }
 0x580   : > { %v1755_v8 = vpack.c.bf16 %v1744_v27, %v1743_v31  ;;  %3474 = vmatprep.subr.bf16.mxu0 %v4316_v6  ;;  %v1721_v62 = vadd.f32 %v4572_v44, %v1720_v4  ;;  %v1749_v0 = vmax.f32 %v1729_v41, 0.0 }
 0x581   : > { %v3401_v25 = vpop.f32.mrf.mxu1 }
 0x582   : > { %v1732_v61 = vadd.f32 %v3401_v25, %v4572_v44  ;;  %3426 = vmatprep.mubr.bf16.mxu0 %v1755_v8  ;;  %v1747_v22 = vmax.f32 %v1721_v62, 0.0 }
 0x583   : > { %v1723_v5 = vpop.f32.mrf.mxu1  ;;  %3427 = vmatmul.mubr.bf16.gmra.mxu0 %v1756_v20 }
 0x584   : > { %v1750_v47 = vmax.f32 %v1732_v61, 0.0  ;;  %v1724_v56 = vadd.f32 %v4572_v44, %v1723_v5  ;;  %3475 = vmatpush3.bf16.msra.mxu0 %v4316_v6 }
 0x585   : > { %3476 = vmatprep.subr.bf16.mxu0 %v4325_v18 }
 0x586   : > { %v1758_v1 = vpack.c.bf16 %v1750_v47, %v1749_v0  ;;  %v1748_v2 = vmax.f32 %v1724_v56, 0.0 }
 0x588   : > { %v1757_v54 = vpack.c.bf16 %v1748_v2, %v1747_v22  ;;  %3434 = vmatprep.subr.bf16.mxu1 %v1758_v1  ;;  %3477 = vmatpush3.bf16.msra.mxu0 %v4325_v18 }
 0x589   : > { %3435 = vmatpush3.bf16.xpose.msra.mxu1 %v1758_v1  ;;  %3478 = vmatprep.subr.bf16.mxu0 %v4334_v34 }
 0x58a   : > { %3430 = vmatprep.mubr.bf16.mxu0 %v1757_v54  ;;  %3436 = vmatprep.subr.bf16.mxu1 %v1757_v54 }
 0x58b   : > { %3431 = vmatmul.mubr.bf16.gmra.mxu0 %v1758_v1 }
 0x58c   : > { %3479 = vmatpush3.bf16.msra.mxu0 %v4334_v34  ;;  %3482 = vmatprep.mubr.bf16.mxu0 %v4578_v60 }
 0x58d   : > { %3480 = vmatprep.subr.bf16.mxu0 %v4343_v55 }
 0x590   : > { %3481 = vmatpush3.bf16.msra.mxu0 %v4343_v55 }
 0x591   : > { %3437 = vmatpush3.bf16.xpose.msra.mxu1 %v1757_v54 }
 0x592   : > { %3438 = vmatprep.subr.bf16.mxu1 %v1756_v20 }
 0x593   : > { %3483 = vmatmul.mubr.bf16.vlgmr.msra.gmra.mxu0 %v4580_v12 }
 0x594   : > { %3486 = vmatprep.mubr.bf16.mxu0 %v4590_v15 }
 0x599   : > { %3439 = vmatpush3.bf16.xpose.msra.mxu1 %v1756_v20 }
 0x59a   : > { %3440 = vmatprep.subr.bf16.mxu1 %v1755_v8 }
 0x59b   : > { %3487 = vmatmul.mubr.bf16.gmra.mxu0 %v1754_v40 }
 0x59c   : > { %3490 = vmatprep.mubr.bf16.mxu0 %v1755_v8 }
 0x5a1   : > { %3441 = vmatpush3.bf16.xpose.msra.mxu1 %v1755_v8 }
 0x5a2   : > { %3442 = vmatprep.subr.bf16.mxu1 %v1754_v40 }
 0x5a3   : > { %3491 = vmatmul.mubr.bf16.gmra.mxu0 %v1756_v20 }
 0x5a4   : > { %3494 = vmatprep.mubr.bf16.mxu0 %v1757_v54 }
 0x5a9   : > { %3443 = vmatpush3.bf16.xpose.msra.mxu1 %v1754_v40 }
 0x5aa   : > { %3444 = vmatprep.subr.bf16.mxu1 %v4590_v15 }
 0x5ab   : > { %3495 = vmatmul.mubr.bf16.gmra.mxu0 %v1758_v1 }
 0x5b1   : > { %3445 = vmatpush3.bf16.xpose.msra.mxu1 %v4590_v15 }
 0x5b2   : > { %3446 = vmatprep.subr.bf16.mxu1 %v4580_v12 }
 0x5b9   : > { %3447 = vmatpush3.bf16.xpose.msra.mxu1 %v4580_v12 }
 0x5ba   : > { %3448 = vmatprep.subr.bf16.mxu1 %v4578_v60 }
 0x5c1   : > { %3449 = vmatpush3.bf16.xpose.msra.mxu1 %v4578_v60 }
 0x632   : > { %v3420_v6 = vpop.f32.mrf.mxu0 }
 0x634   : > { %v1857_v18 = vpop.f32.mrf.mxu0 }
 0x636   : > { %v3421_v34 = vpop.f32.mrf.mxu0 }
 0x637   : > { %v1921_v21 = vpack.c.bf16 %v3421_v34, %v3420_v6 }
 0x638   : > { %v1860_v55 = vpop.f32.mrf.mxu0 }
 0x639   : > { %v1920_v45 = vpack.c.bf16 %v1860_v55, %v1857_v18 }
 0x63a   : > { %v3424_v48 = vpop.f32.mrf.mxu0 }
 0x63b   : > { %3450 = vmatprep.mubr.bf16.mxu1 %v1920_v45 }
 0x63c   : > { %v1873_v14 = vpop.f32.mrf.mxu0  ;;  %3451 = vmatmul.mubr.bf16.vlgmr.msra.gmra.mxu1 %v1921_v21 }
 0x63e   : > { %v3425_v39 = vpop.f32.mrf.mxu0 }
 0x63f   : > { %v1923_v36 = vpack.c.bf16 %v3425_v39, %v3424_v48 }
 0x640   : > { %v1876_v15 = vpop.f32.mrf.mxu0 }
 0x641   : > { %v1922_v40 = vpack.c.bf16 %v1876_v15, %v1873_v14 }
 0x643   : > { %v3428_v59 = vpop.f32.mrf.mxu0  ;;  %3454 = vmatprep.mubr.bf16.mxu1 %v1922_v40 }
 0x644   : > { %3455 = vmatmul.mubr.bf16.gmra.mxu1 %v1923_v36 }
 0x645   : > { %v1889_v12 = vpop.f32.mrf.mxu0 }
 0x647   : > { %v3429_v32 = vpop.f32.mrf.mxu0 }
 0x648   : > { %v1925_v43 = vpack.c.bf16 %v3429_v32, %v3428_v59 }
 0x649   : > { %v1892_v60 = vpop.f32.mrf.mxu0 }
 0x64a   : > { %v1924_v13 = vpack.c.bf16 %v1892_v60, %v1889_v12 }
 0x64b   : > { %v3432_v19 = vpop.f32.mrf.mxu0 }
 0x64c   : > { %3458 = vmatprep.mubr.bf16.mxu1 %v1924_v13 }
 0x64d   : > { %v1905_v52 = vpop.f32.mrf.mxu0  ;;  %3459 = vmatmul.mubr.bf16.gmra.mxu1 %v1925_v43 }
 0x64f   : > { %v3433_v33 = vpop.f32.mrf.mxu0 }
 0x650   : > { %v1927_v28 = vpack.c.bf16 %v3433_v33, %v3432_v19 }
 0x651   : > { %v1908_v31 = vpop.f32.mrf.mxu0 }
 0x652   : > { %v1926_v27 = vpack.c.bf16 %v1908_v31, %v1905_v52 }
 0x653   : > { %v3484_v4 = vpop.f32.mrf.mxu0 }
 0x654   : > { %3462 = vmatprep.mubr.bf16.mxu1 %v1926_v27 }
 0x655   : > { %3463 = vmatmul.mubr.bf16.gmra.mxu1 %v1927_v28  ;;  %v2259_v8 = vpop.f32.mrf.mxu0 }
 0x657   : > { %v3485_v41 = vpop.f32.mrf.mxu0 }
 0x658   : > { %v2323_v14 = vpack.c.bf16 %v3485_v41, %v3484_v4 }
 0x659   : > { %v2262_v20 = vpop.f32.mrf.mxu0 }
 0x65a   : > { %v2322_v39 = vpack.c.bf16 %v2262_v20, %v2259_v8 }
 0x65b   : > { %v3488_v25 = vpop.f32.mrf.mxu0 }
 0x65d   : > { %v2275_v62 = vpop.f32.mrf.mxu0 }
 0x65f   : > { %v3489_v61 = vpop.f32.mrf.mxu0 }
 0x660   : > { %v2325_v21 = vpack.c.bf16 %v3489_v61, %v3488_v25 }
 0x661   : > { %v2278_v5 = vpop.f32.mrf.mxu0 }
 0x662   : > { %v2324_v48 = vpack.c.bf16 %v2278_v5, %v2275_v62 }
 0x663   : > { %v3492_v0 = vpop.f32.mrf.mxu0 }
 0x665   : > { %v2291_v47 = vpop.f32.mrf.mxu0 }
 0x667   : > { %v3493_v56 = vpop.f32.mrf.mxu0 }
 0x668   : > { %v2327_v55 = vpack.c.bf16 %v3493_v56, %v3492_v0 }
 0x669   : > { %v2294_v22 = vpop.f32.mrf.mxu0 }
 0x66a   : > { %v2326_v45 = vpack.c.bf16 %v2294_v22, %v2291_v47 }
 0x66b   : > { %v3496_v1 = vpop.f32.mrf.mxu0 }
 0x66d   : > { %v2307_v2 = vpop.f32.mrf.mxu0 }
 0x66f   : > { %v3497_v54 = vpop.f32.mrf.mxu0 }
 0x670   : > { %v2329_v6 = vpack.c.bf16 %v3497_v54, %v3496_v1 }
 0x671   : > { %v2310_v18 = vpop.f32.mrf.mxu0 }
 0x672   : > { %v2328_v34 = vpack.c.bf16 %v2310_v18, %v2307_v2  ;;  %3498 = vmatprep.subr.bf16.mxu0 %v2329_v6 }
 0x673   : > { %3499 = vmatpush3.bf16.msra.mxu0 %v2329_v6 }
 0x674   : > { %3500 = vmatprep.subr.bf16.mxu0 %v2328_v34 }
 0x677   : > { %3501 = vmatpush3.bf16.msra.mxu0 %v2328_v34 }
 0x678   : > { %3502 = vmatprep.subr.bf16.mxu0 %v2327_v55 }
 0x67b   : > { %3503 = vmatpush3.bf16.msra.mxu0 %v2327_v55 }
 0x67c   : > { %3504 = vmatprep.subr.bf16.mxu0 %v2326_v45 }
 0x67f   : > { %3505 = vmatpush3.bf16.msra.mxu0 %v2326_v45 }
 0x680   : > { %3506 = vmatprep.subr.bf16.mxu0 %v2325_v21 }
 0x683   : > { %3507 = vmatpush3.bf16.msra.mxu0 %v2325_v21 }
 0x684   : > { %3508 = vmatprep.subr.bf16.mxu0 %v2324_v48 }
 0x687   : > { %3509 = vmatpush3.bf16.msra.mxu0 %v2324_v48 }
 0x688   : > { %3510 = vmatprep.subr.bf16.mxu0 %v2323_v14 }
 0x68b   : > { %3511 = vmatpush3.bf16.msra.mxu0 %v2323_v14 }
 0x68c   : > { %3512 = vmatprep.subr.bf16.mxu0 %v2322_v39 }
 0x68f   : > { %3513 = vmatpush3.bf16.msra.mxu0 %v2322_v39 }
 0x6fc   : > { %v3452_v15 = vpop.f32.mrf.mxu1 }
 0x6fd   : > { %v2954_v40 = vmul.f32 -0.088388346, %v3452_v15 }
 0x6fe   : > { %v1962_v36 = vpop.f32.mrf.mxu1 }
 0x6ff   : > { %v2061_v59 = vmul.f32 1.442695, %v2954_v40  ;;  %v2952_v12 = vmul.f32 -0.088388346, %v1962_v36 }
 0x700   : > { %v3453_v32 = vpop.f32.mrf.mxu1 }
 0x701   : > { %3761 = vpow2.f32 %v2061_v59  ;;  %v2057_v60 = vmul.f32 1.442695, %v2952_v12  ;;  %v2955_v13 = vmul.f32 -0.088388346, %v3453_v32 }
 0x702   : > { %v1965_v43 = vpop.f32.mrf.mxu1 }
 0x703   : > { %3763 = vpow2.f32 %v2057_v60  ;;  %v2063_v19 = vmul.f32 1.442695, %v2955_v13  ;;  %v2953_v52 = vmul.f32 -0.088388346, %v1965_v43 }
 0x704   : > { %v3456_v33 = vpop.f32.mrf.mxu1 }
 0x705   : > { %3765 = vpow2.f32 %v2063_v19  ;;  %v2059_v31 = vmul.f32 1.442695, %v2953_v52  ;;  %v2958_v27 = vmul.f32 -0.088388346, %v3456_v33 }
 0x706   : > { %v1978_v28 = vpop.f32.mrf.mxu1 }
 0x707   : > { %3767 = vpow2.f32 %v2059_v31  ;;  %v2069_v4 = vmul.f32 1.442695, %v2958_v27  ;;  %v2956_v8 = vmul.f32 -0.088388346, %v1978_v28 }
 0x708   : > { %v3457_v41 = vpop.f32.mrf.mxu1 }
 0x709   : > { %3769 = vpow2.f32 %v2069_v4  ;;  %v2065_v20 = vmul.f32 1.442695, %v2956_v8  ;;  %v2959_v25 = vmul.f32 -0.088388346, %v3457_v41 }
 0x70a   : > { %v1981_v62 = vpop.f32.mrf.mxu1 }
 0x70b   : > { %3771 = vpow2.f32 %v2065_v20  ;;  %v2071_v61 = vmul.f32 1.442695, %v2959_v25  ;;  %v2957_v5 = vmul.f32 -0.088388346, %v1981_v62 }
 0x70d   : > { %3773 = vpow2.f32 %v2071_v61  ;;  %v2067_v0 = vmul.f32 1.442695, %v2957_v5  ;;  %v3460_v47 = vpop.f32.mrf.mxu1 }
 0x70e   : > { %v3762_v56 = vpop.eup %3761  ;;  %v2962_v22 = vmul.f32 -0.088388346, %v3460_v47 }
 0x70f   : > { %v2091_v1 = vadd.f32 1.0, %v3762_v56  ;;  %3775 = vpow2.f32 %v2067_v0  ;;  %v1994_v2 = vpop.f32.mrf.mxu1 }
 0x710   : > { %v3764_v54 = vpop.eup %3763  ;;  %v2077_v6 = vmul.f32 1.442695, %v2962_v22  ;;  %v2960_v18 = vmul.f32 -0.088388346, %v1994_v2 }
 0x711   : > { %3777 = vrcp.f32 %v2091_v1  ;;  %v2089_v34 = vadd.f32 1.0, %v3764_v54  ;;  %v3461_v55 = vpop.f32.mrf.mxu1 }
 0x712   : > { %v3766_v45 = vpop.eup %3765  ;;  %3779 = vpow2.f32 %v2077_v6  ;;  %v2073_v21 = vmul.f32 1.442695, %v2960_v18  ;;  %v2963_v48 = vmul.f32 -0.088388346, %v3461_v55 }
 0x713   : > { %3781 = vrcp.f32 %v2089_v34  ;;  %v2092_v14 = vadd.f32 1.0, %v3766_v45  ;;  %v1997_v39 = vpop.f32.mrf.mxu1 }
 0x714   : > { %v3768_v15 = vpop.eup %3767  ;;  %3783 = vpow2.f32 %v2073_v21  ;;  %v2079_v40 = vmul.f32 1.442695, %v2963_v48  ;;  %v2961_v36 = vmul.f32 -0.088388346, %v1997_v39 }
 0x715   : > { %3785 = vrcp.f32 %v2092_v14  ;;  %v2090_v59 = vadd.f32 1.0, %v3768_v15  ;;  %v3464_v12 = vpop.f32.mrf.mxu1 }
 0x716   : > { %v3770_v32 = vpop.eup %3769  ;;  %3787 = vpow2.f32 %v2079_v40  ;;  %v2075_v60 = vmul.f32 1.442695, %v2961_v36  ;;  %v2966_v13 = vmul.f32 -0.088388346, %v3464_v12 }
 0x717   : > { %3789 = vrcp.f32 %v2090_v59  ;;  %v2095_v43 = vadd.f32 1.0, %v3770_v32  ;;  %v2010_v19 = vpop.f32.mrf.mxu1 }
 0x718   : > { %v3772_v52 = vpop.eup %3771  ;;  %3791 = vpow2.f32 %v2075_v60  ;;  %v2085_v33 = vmul.f32 1.442695, %v2966_v13  ;;  %v2964_v31 = vmul.f32 -0.088388346, %v2010_v19 }
 0x719   : > { %3793 = vrcp.f32 %v2095_v43  ;;  %v2093_v27 = vadd.f32 1.0, %v3772_v52  ;;  %v3465_v28 = vpop.f32.mrf.mxu1 }
 0x71a   : > { %v3774_v4 = vpop.eup %3773  ;;  %3795 = vpow2.f32 %v2085_v33  ;;  %v2081_v8 = vmul.f32 1.442695, %v2964_v31  ;;  %v2967_v41 = vmul.f32 -0.088388346, %v3465_v28 }
 0x71b   : > { %3797 = vrcp.f32 %v2093_v27  ;;  %v2096_v20 = vadd.f32 1.0, %v3774_v4  ;;  %v2013_v25 = vpop.f32.mrf.mxu1 }
 0x71c   : > { %v3776_v62 = vpop.eup %3775  ;;  %3799 = vpow2.f32 %v2081_v8  ;;  %v2087_v61 = vmul.f32 1.442695, %v2967_v41  ;;  %v2965_v5 = vmul.f32 -0.088388346, %v2013_v25 }
 0x71d   : > { %3801 = vrcp.f32 %v2096_v20  ;;  %v2094_v0 = vadd.f32 1.0, %v3776_v62 }
 0x71e   : > { %v4623_v47 = vpop.eup %3777  ;;  %3803 = vpow2.f32 %v2087_v61  ;;  %v2083_v56 = vmul.f32 1.442695, %v2965_v5 }
 0x71f   : > { %v3780_v22 = vpop.eup %3779  ;;  %3805 = vrcp.f32 %v2094_v0 }
 0x720   : > { %v4625_v1 = vpop.eup %3781  ;;  %3807 = vpow2.f32 %v2083_v56  ;;  %v2099_v21 = vadd.f32 1.0, %v3780_v22 }
 0x721   : > { %v3784_v2 = vpop.eup %3783 }
 0x722   : > { %v4627_v54 = vpop.eup %3785  ;;  %v2097_v6 = vadd.f32 1.0, %v3784_v2 }
 0x723   : > { %v3788_v18 = vpop.eup %3787  ;;  %v4635_v15 = vpack.c.bf16 %v4627_v54, %v4623_v47 }
 0x724   : > { %v4629_v34 = vpop.eup %3789  ;;  %v2100_v55 = vadd.f32 1.0, %v3788_v18  ;;  %3809 = vrcp.f32 %v2097_v6 }
 0x725   : > { %v3792_v45 = vpop.eup %3791  ;;  %v2969_v48 = vpack.c.bf16 %v4629_v34, %v4625_v1 }
 0x726   : > { %v3794_v14 = vpop.eup %3793  ;;  %v2098_v39 = vadd.f32 1.0, %v3792_v45  ;;  %3811 = vrcp.f32 %v2100_v55 }
 0x727   : > { %v3796_v40 = vpop.eup %3795  ;;  %3514 = vmatprep.mubr.msk.bf16.mxu0 %vm4416_vm13, %v2969_v48  ;;  %v2143_v55 = vsel %vm4444_vm6, %v3794_v14, 0.0  ;;  %vm5028_vm6 = vnez %v4976_v37  ;;  %v3658_v37 = vld [vmem:[%s4963_s9 + $0x30] sm:$0xff]  }
 0x728   : > { %v3798_v36 = vpop.eup %3797  ;;  %3813 = vrcp.f32 %v2098_v39  ;;  %v2103_v59 = vadd.f32 1.0, %v3796_v40  ;;  %3515 = vmatmul.mubr.msk.bf16.vlgmr.msra.gmra.mxu0 %vm4424_vm14, %v4635_v15 }
 0x729   : > { %v3800_v12 = vpop.eup %3799  ;;  %3815 = vrcp.f32 %v2099_v21 }
 0x72a   : > { %v3802_v32 = vpop.eup %3801  ;;  %3817 = vrcp.f32 %v2103_v59  ;;  %v2101_v60 = vadd.f32 1.0, %v3800_v12 }
 0x72b   : > { %v3804_v13 = vpop.eup %3803  ;;  %v4644_v27 = vpack.c.bf16 %v3802_v32, %v3794_v14 }
 0x72c   : > { %v3806_v43 = vpop.eup %3805  ;;  %3819 = vrcp.f32 %v2101_v60  ;;  %v2104_v19 = vadd.f32 1.0, %v3804_v13 }
 0x72d   : > { %v3808_v52 = vpop.eup %3807  ;;  %v4642_v33 = vpack.c.bf16 %v3806_v43, %v3798_v36 }
 0x72e   : > { %3821 = vrcp.f32 %v2104_v19  ;;  %v2102_v31 = vadd.f32 1.0, %v3808_v52 }
 0x72f   : > { %3518 = vmatprep.mubr.msk.bf16.mxu0 %vm4460_vm8, %v4642_v33 }
 0x730   : > { %3823 = vrcp.f32 %v2102_v31  ;;  %3519 = vmatmul.mubr.msk.bf16.gmra.mxu0 %vm4471_vm15, %v4644_v27 }
 0x731   : > { %v3810_v28 = vpop.eup %3809 }
 0x732   : > { %v2145_v57 = vsel %vm4483_vm10, %v3810_v28, 0.0  ;;  %vm5026_vm10 = vnez %v4980_v63  ;;  %v3657_v63 = vld [vmem:[%s4963_s9 + $0x38] sm:$0xff]  }
 0x733   : > { %v3812_v4 = vpop.eup %3811  ;;  %v2139_v17 = vsel %vm5026_vm10, %v4623_v47, 0.0  ;;  %3530 = vmatprep.subr.bf16.mxu1 %v3657_v63  ;;  %v3662_v47 = vld [vmem:[%s4963_s9 + $0x10] sm:$0xff]  }
 0x734   : > { %v2148_v10 = vsel %vm4495_vm5, %v3812_v4, 0.0  ;;  %vm5027_vm5 = vnez %v4990_v53  ;;  %3531 = vmatpush3.bf16.msra.mxu1 %v3657_v63 }
 0x735   : > { %v3814_v8 = vpop.eup %3813  ;;  %v2142_v50 = vsel %vm5027_vm5, %v3806_v43, 0.0  ;;  %3532 = vmatprep.subr.bf16.mxu1 %v3658_v37 }
 0x736   : > { %v3816_v41 = vpop.eup %3815  ;;  %v4652_v20 = vpack.c.bf16 %v3814_v8, %v3810_v28 }
 0x737   : > { %v3818_v25 = vpop.eup %3817  ;;  %v4654_v62 = vpack.c.bf16 %v3812_v4, %v3816_v41  ;;  %v2147_v18 = vsel %vm4491_vm9, %v3816_v41, 0.0  ;;  %vm5023_vm9 = vnez %v5002_v3  ;;  %v2137_v3 = vsel %vm5028_vm6, %v4625_v1, 0.0  ;;  %v3663_v1 = vld [vmem:[%s4963_s9 + $0x8] sm:$0xff]  }
 0x738   : > { %3522 = vmatprep.mubr.msk.bf16.mxu0 %vm4507_vm11, %v4652_v20  ;;  %v2151_v61 = vsel %vm4531_vm3, %v3818_v25, 0.0  ;;  %v2146_v11 = vsel %vm5023_vm9, %v3814_v8, 0.0  ;;  %3533 = vmatpush3.bf16.msra.mxu1 %v3658_v37 }
 0x739   : > { %v3820_v5 = vpop.eup %3819  ;;  %3523 = vmatmul.mubr.msk.bf16.gmra.mxu0 %vm4515_vm1, %v4654_v62  ;;  %2181 = vadd.xlane.f32.xlu1 %v2151_v61 }
 0x73a   : > { %v2149_v56 = vsel %vm4523_vm0, %v3820_v5, 0.0  ;;  %vm5029_vm0 = vnez %v4982_v29  ;;  %v3659_v29 = vld [vmem:[%s4963_s9 + $0x28] sm:$0xff]  }
 0x73b   : > { %v3822_v0 = vpop.eup %3821  ;;  %3534 = vmatprep.subr.bf16.mxu1 %v3659_v29 }
 0x73c   : > { %v2152_v22 = vsel %vm4535_vm7, %v3822_v0, 0.0  ;;  %v4670_v42 = vpack.c.bf16 %v3822_v0, %v3818_v25  ;;  %vm5024_vm7 = vnez %v4988_v35  ;;  %v2140_v35 = vsel %vm5029_vm0, %v4627_v54, 0.0  ;;  %3535 = vmatpush3.bf16.msra.mxu1 %v3659_v29  ;;  %v3664_v54 = vld [vmem:[%s4963_s9] sm:$0xff]  }
 0x73d   : > { %v3824_v2 = vpop.eup %3823  ;;  %2177 = vadd.xlane.f32.xlu1 %v2149_v56  ;;  %2183 = vadd.xlane.f32.xlu0 %v2152_v22  ;;  %v2141_v16 = vsel %vm5024_vm7, %v3798_v36, 0.0 }
 0x73e   : > { %v4668_v6 = vpack.c.bf16 %v3824_v2, %v3820_v5  ;;  %v2150_v9 = vsel %vm4527_vm2, %v3824_v2, 0.0  ;;  %vm5030_vm2 = vnez %v4978_v30  ;;  %v3661_v30 = vld [vmem:[%s4963_s9 + $0x18] sm:$0xff]  }
 0x73f   : > { %v2138_v53 = vsel %vm5030_vm2, %v4629_v34, 0.0 }
 0x740   : > { %3526 = vmatprep.mubr.msk.bf16.mxu0 %vm4543_vm4, %v4668_v6 }
 0x741   : > { %2173 = vadd.xlane.f32.xlu1 %v2147_v18  ;;  %3527 = vmatmul.mubr.msk.bf16.gmra.mxu0 %vm4551_vm12, %v4670_v42 }
 0x742   : > { %2179 = vadd.xlane.f32.xlu0 %v2150_v9  ;;  %3578 = vmatprep.mubr.msk.bf16.mxu0 %vm4416_vm13, %v2969_v48  ;;  %vm5025_vm13 = vnez %v4994_v58  ;;  %v3660_v58 = vld [vmem:[%s4963_s9 + $0x20] sm:$0xff]  }
 0x743   : > { %v2144_v23 = vsel %vm5025_vm13, %v3802_v32, 0.0  ;;  %3536 = vmatprep.subr.bf16.mxu1 %v3660_v58 }
 0x744   : > { %3537 = vmatpush3.bf16.msra.mxu1 %v3660_v58 }
 0x745   : > { %2169 = vadd.xlane.f32.xlu1 %v2145_v57  ;;  %3538 = vmatprep.subr.bf16.mxu1 %v3661_v30 }
 0x746   : > { %2175 = vadd.xlane.f32.xlu0 %v2148_v10 }
 0x748   : > { %3539 = vmatpush3.bf16.msra.mxu1 %v3661_v30 }
 0x749   : > { %2165 = vadd.xlane.f32.xlu1 %v2143_v55  ;;  %3540 = vmatprep.subr.bf16.mxu1 %v3662_v47 }
 0x74a   : > { %2171 = vadd.xlane.f32.xlu0 %v2146_v11 }
 0x74c   : > { %3541 = vmatpush3.bf16.msra.mxu1 %v3662_v47 }
 0x74d   : > { %2161 = vadd.xlane.f32.xlu1 %v2141_v16  ;;  %3542 = vmatprep.subr.bf16.mxu1 %v3663_v1 }
 0x74e   : > { %2167 = vadd.xlane.f32.xlu0 %v2144_v23 }
 0x750   : > { %3543 = vmatpush3.bf16.msra.mxu1 %v3663_v1 }
 0x751   : > { %2157 = vadd.xlane.f32.xlu1 %v2139_v17  ;;  %3544 = vmatprep.subr.bf16.mxu1 %v3664_v54 }
 0x752   : > { %2163 = vadd.xlane.f32.xlu0 %v2142_v50 }
 0x754   : > { %3545 = vmatpush3.bf16.msra.mxu1 %v3664_v54 }
 0x755   : > { %2153 = vadd.xlane.f32.xlu1 %v2137_v3 }
 0x756   : > { %2159 = vadd.xlane.f32.xlu0 %v2140_v35 }
 0x75a   : > { %2155 = vadd.xlane.f32.xlu0 %v2138_v53 }
 0x7e8   : > { %v3516_v34 = vpop.f32.mrf.mxu0 }
 0x7e9   : > { %v2373_v39 = vadd.f32 %v3516_v34, %v4572_v44 }
 0x7ea   : > { %v2364_v45 = vpop.f32.mrf.mxu0 }
 0x7eb   : > { %v2365_v48 = vadd.f32 %v4572_v44, %v2364_v45  ;;  %v2429_v13 = vmax.f32 %v2373_v39, 0.0 }
 0x7ec   : > { %v3517_v21 = vpop.f32.mrf.mxu0 }
 0x7ed   : > { %v2376_v14 = vadd.f32 %v3517_v21, %v4572_v44  ;;  %v2427_v32 = vmax.f32 %v2365_v48, 0.0 }
 0x7ee   : > { %v2367_v40 = vpop.f32.mrf.mxu0 }
 0x7ef   : > { %v2368_v36 = vadd.f32 %v4572_v44, %v2367_v40  ;;  %v2430_v59 = vmax.f32 %v2376_v14, 0.0 }
 0x7f0   : > { %v3520_v12 = vpop.f32.mrf.mxu0 }
 0x7f1   : > { %v2428_v60 = vmax.f32 %v2368_v36, 0.0  ;;  %v2444_v52 = vpack.c.bf16 %v2430_v59, %v2429_v13  ;;  %v2389_v8 = vadd.f32 %v3520_v12, %v4572_v44  ;;  %v2184_v36 = vpop.xlane.xlu0 %2183  ;;  %v2182_v59 = vpop.xlane.xlu1 %2181 }
 0x7f2   : > { %v2380_v43 = vpop.f32.mrf.mxu0  ;;  %v2199_v38 = vadd.f32 1.0, %v2182_v59 }
 0x7f3   : > { %v2443_v19 = vpack.c.bf16 %v2428_v60, %v2427_v32  ;;  %v2381_v28 = vadd.f32 %v4572_v44, %v2380_v43  ;;  %v2433_v22 = vmax.f32 %v2389_v8, 0.0  ;;  %v2200_v8 = vadd.f32 1.0, %v2184_v36 }
 0x7f4   : > { %v3521_v31 = vpop.f32.mrf.mxu0  ;;  %3825 = vrsqrt.f32 %v2199_v38 }
 0x7f5   : > { %v2392_v4 = vadd.f32 %v3521_v31, %v4572_v44  ;;  %3546 = vmatprep.mubr.bf16.mxu1 %v2443_v19  ;;  %v2431_v5 = vmax.f32 %v2381_v28, 0.0  ;;  %v2180_v12 = vpop.xlane.xlu0 %2179  ;;  %v2178_v32 = vpop.xlane.xlu1 %2177  ;;  %3827 = vrsqrt.f32 %v2200_v8 }
 0x7f6   : > { %v2383_v41 = vpop.f32.mrf.mxu0  ;;  %3547 = vmatmul.mubr.bf16.vlgmr.msra.gmra.mxu1 %v2444_v52 }
 0x7f7   : > { %v2384_v25 = vadd.f32 %v4572_v44, %v2383_v41  ;;  %v2434_v61 = vmax.f32 %v2392_v4, 0.0 }
 0x7f9   : > { %v2432_v0 = vmax.f32 %v2384_v25, 0.0  ;;  %v3524_v56 = vpop.f32.mrf.mxu0  ;;  %v2446_v9 = vpack.c.bf16 %v2434_v61, %v2433_v22  ;;  %v2174_v19 = vpop.xlane.xlu1 %2173  ;;  %v2197_v25 = vadd.f32 1.0, %v2178_v32  ;;  %v2198_v61 = vadd.f32 1.0, %v2180_v12 }
 0x7fa   : > { %v2405_v11 = vadd.f32 %v3524_v56, %v4572_v44 }
 0x7fb   : > { %v2445_v2 = vpack.c.bf16 %v2432_v0, %v2431_v5  ;;  %v2396_v18 = vpop.f32.mrf.mxu0  ;;  %3829 = vrsqrt.f32 %v2197_v25 }
 0x7fc   : > { %v2397_v10 = vadd.f32 %v4572_v44, %v2396_v18  ;;  %v2437_v63 = vmax.f32 %v2405_v11, 0.0  ;;  %v2195_v18 = vadd.f32 1.0, %v2174_v19  ;;  %3831 = vrsqrt.f32 %v2198_v61 }
 0x7fd   : > { %v3525_v57 = vpop.f32.mrf.mxu0  ;;  %3550 = vmatprep.mubr.bf16.mxu1 %v2445_v2 }
 0x7fe   : > { %v2408_v55 = vadd.f32 %v3525_v57, %v4572_v44  ;;  %3551 = vmatmul.mubr.bf16.gmra.mxu1 %v2446_v9  ;;  %v2435_v3 = vmax.f32 %v2397_v10, 0.0 }
 0x7ff   : > { %v2399_v16 = vpop.f32.mrf.mxu0 }
 0x800   : > { %v2400_v23 = vadd.f32 %v4572_v44, %v2399_v16  ;;  %v2438_v17 = vmax.f32 %v2408_v55, 0.0 }
 0x801   : > { %v3528_v50 = vpop.f32.mrf.mxu0 }
 0x802   : > { %v2436_v35 = vmax.f32 %v2400_v23, 0.0  ;;  %v2448_v29 = vpack.c.bf16 %v2438_v17, %v2437_v63  ;;  %v2421_v1 = vadd.f32 %v3528_v50, %v4572_v44 }
 0x803   : > { %v2412_v53 = vpop.f32.mrf.mxu0 }
 0x804   : > { %v2447_v37 = vpack.c.bf16 %v2436_v35, %v2435_v3  ;;  %v2413_v30 = vadd.f32 %v4572_v44, %v2412_v53  ;;  %v2441_v14 = vmax.f32 %v2421_v1, 0.0 }
 0x805   : > { %v3529_v58 = vpop.f32.mrf.mxu0 }
 0x806   : > { %v2424_v47 = vadd.f32 %v3529_v58, %v4572_v44  ;;  %3554 = vmatprep.mubr.bf16.mxu1 %v2447_v37  ;;  %v2439_v21 = vmax.f32 %v2413_v30, 0.0  ;;  %v4769_v37 = vpop.eup %3825 }
 0x807   : > { %v2415_v54 = vpop.f32.mrf.mxu0  ;;  %3555 = vmatmul.mubr.bf16.gmra.mxu1 %v2448_v29  ;;  %v4771_v29 = vpop.eup %3827 }
 0x808   : > { %v2416_v34 = vadd.f32 %v4572_v44, %v2415_v54  ;;  %v2442_v45 = vmax.f32 %v2424_v47, 0.0  ;;  %v2176_v44 = vpop.xlane.xlu0 %2175  ;;  %v4773_v47 = vpop.eup %3829 }
 0x809   : > { %v2196_v56 = vadd.f32 1.0, %v2176_v44 }
 0x80a   : > { %v2440_v48 = vmax.f32 %v2416_v34, 0.0  ;;  %v2450_v40 = vpack.c.bf16 %v2442_v45, %v2441_v14  ;;  %v4781_v45 = vpop.eup %3831 }
 0x80b   : > { %3833 = vrsqrt.f32 %v2196_v56 }
 0x80c   : > { %v2449_v39 = vpack.c.bf16 %v2440_v48, %v2439_v21  ;;  %v2172_v28 = vpop.xlane.xlu0 %2171  ;;  %3835 = vrsqrt.f32 %v2195_v18 }
 0x80d   : > { %v2194_v57 = vadd.f32 1.0, %v2172_v28 }
 0x80e   : > { %3558 = vmatprep.mubr.bf16.mxu1 %v2449_v39 }
 0x80f   : > { %3559 = vmatmul.mubr.bf16.gmra.mxu1 %v2450_v40  ;;  %3837 = vrsqrt.f32 %v2194_v57 }
 0x810   : > { %3590 = vmatprep.mubr.msk.bf16.mxu1 %vm4543_vm4, %v4668_v6  ;;  %v2170_v6 = vpop.xlane.xlu1 %2169  ;;  %v2168_v0 = vpop.xlane.xlu0 %2167 }
 0x811   : > { %v2193_v11 = vadd.f32 1.0, %v2170_v6  ;;  %v2192_v17 = vadd.f32 1.0, %v2168_v0 }
 0x813   : > { %3839 = vrsqrt.f32 %v2193_v11 }
 0x814   : > { %v2166_v22 = vpop.xlane.xlu1 %2165  ;;  %v2164_v10 = vpop.xlane.xlu0 %2163  ;;  %3841 = vrsqrt.f32 %v2192_v17 }
 0x815   : > { %v2191_v3 = vadd.f32 1.0, %v2166_v22  ;;  %v2190_v35 = vadd.f32 1.0, %v2164_v10 }
 0x817   : > { %3843 = vrsqrt.f32 %v2191_v3 }
 0x818   : > { %v2162_v16 = vpop.xlane.xlu1 %2161  ;;  %v2160_v63 = vpop.xlane.xlu0 %2159  ;;  %3845 = vrsqrt.f32 %v2190_v35 }
 0x819   : > { %v2189_v1 = vadd.f32 1.0, %v2162_v16  ;;  %v2188_v48 = vadd.f32 1.0, %v2160_v63  ;;  %v4791_v36 = vpop.eup %3833 }
 0x81a   : > { %v4798_v19 = vpop.eup %3835 }
 0x81b   : > { %3847 = vrsqrt.f32 %v2189_v1 }
 0x81c   : > { %v2158_v58 = vpop.xlane.xlu1 %2157  ;;  %v2156_v59 = vpop.xlane.xlu0 %2155  ;;  %3849 = vrsqrt.f32 %v2188_v48 }
 0x81d   : > { %v2187_v12 = vadd.f32 1.0, %v2158_v58  ;;  %v2186_v38 = vadd.f32 1.0, %v2156_v59  ;;  %v4803_v8 = vpop.eup %3837 }
 0x81f   : > { %3851 = vrsqrt.f32 %v2187_v12 }
 0x820   : > { %v2154_v28 = vpop.xlane.xlu1 %2153  ;;  %v4810_v56 = vpop.eup %3839  ;;  %3853 = vrsqrt.f32 %v2186_v38 }
 0x821   : > { %v2185_v25 = vadd.f32 1.0, %v2154_v28 }
 0x823   : > { %3855 = vrsqrt.f32 %v2185_v25 }
 0x8b6   : > { %v4753_v60 = vpop.f32.mrf.mxu1 }
 0x8b8   : > { %v4755_v13 = vpop.f32.mrf.mxu1 }
 0x8ba   : > { %v4757_v43 = vpop.f32.mrf.mxu1 }
 0x8bc   : > { %v4759_v52 = vpop.f32.mrf.mxu1 }
 0x8be   : > { %v4761_v31 = vpop.f32.mrf.mxu1 }
 0x8c0   : > { %v4763_v4 = vpop.f32.mrf.mxu1 }
 0x8c2   : > { %v4765_v41 = vpop.f32.mrf.mxu1 }
 0x8c4   : > { %v4767_v5 = vpop.f32.mrf.mxu1 }
 0x8c7   : > { %v3556_v2 = vpop.f32.mrf.mxu1 }
 0x8c8   : > { %v4801_v6 = vmul.f32 %v4798_v19, %v3556_v2  ;;  %v4815_v2 = vpop.eup %3841 }
 0x8c9   : > { %v2581_v9 = vpop.f32.mrf.mxu1  ;;  %v4819_v18 = vmul.f32 %v4815_v2, %v4765_v41  ;;  %v4823_v10 = vpop.eup %3843 }
 0x8ca   : > { %v4813_v22 = vmul.f32 %v4810_v56, %v2581_v9  ;;  %v4829_v9 = vmul.f32 %v4823_v10, %v4761_v31 }
 0x8cb   : > { %v3557_v55 = vpop.f32.mrf.mxu1 }
 0x8cc   : > { %v4794_v32 = vmul.f32 %v4791_v36, %v3557_v55  ;;  %v4825_v55 = vpop.eup %3845  ;;  %v2631_v11 = vpack.c.bf16 %v4819_v18, %v4829_v9 }
 0x8cd   : > { %v2584_v23 = vpop.f32.mrf.mxu1  ;;  %v4835_v41 = vmul.f32 %v4825_v55, %v4767_v5  ;;  %v4837_v16 = vpop.eup %3847 }
 0x8ce   : > { %v2633_v61 = vpack.c.bf16 %v4794_v32, %v4801_v6  ;;  %v4808_v0 = vmul.f32 %v4803_v8, %v2584_v23  ;;  %v4841_v23 = vmul.f32 %v4837_v16, %v4763_v4  ;;  %v3850_v31 = vpop.eup %3849 }
 0x8cf   : > { %v3560_v50 = vpop.f32.mrf.mxu1  ;;  %v2615_v17 = vmul.f32 %v3850_v31, %v4757_v43  ;;  %v3852_v3 = vpop.eup %3851 }
 0x8d0   : > { %v4776_v54 = vmul.f32 %v4769_v37, %v3560_v50  ;;  %v2632_v57 = vpack.c.bf16 %v4808_v0, %v4813_v22  ;;  %v2630_v50 = vpack.c.bf16 %v4835_v41, %v4841_v23  ;;  %v2614_v5 = vmul.f32 %v3852_v3, %v4753_v60  ;;  %v3854_v35 = vpop.eup %3853 }
 0x8d1   : > { %v2597_v53 = vpop.f32.mrf.mxu1  ;;  %v2613_v4 = vmul.f32 %v3854_v35, %v4759_v52 }
 0x8d2   : > { %v4784_v14 = vmul.f32 %v4773_v47, %v2597_v53  ;;  %v2629_v63 = vpack.c.bf16 %v2615_v17, %v2614_v5  ;;  %v3856_v53 = vpop.eup %3855 }
 0x8d3   : > { %v3561_v30 = vpop.f32.mrf.mxu1  ;;  %v2612_v58 = vmul.f32 %v3856_v53, %v4755_v13 }
 0x8d4   : > { %v4779_v34 = vmul.f32 %v4771_v29, %v3561_v30 }
 0x8d5   : > { %v2600_v21 = vpop.f32.mrf.mxu1  ;;  %v2628_v43 = vpack.c.bf16 %v2613_v4, %v2612_v58 }
 0x8d6   : > { %v2635_v39 = vpack.c.bf16 %v4779_v34, %v4776_v54  ;;  %v4789_v40 = vmul.f32 %v4781_v45, %v2600_v21 }
 0x8d8   : > { %v2634_v44 = vpack.c.bf16 %v4789_v40, %v4784_v14  ;;  %3562 = vmatprep.subr.bf16.mxu0 %v2635_v39  ;;  %3594 = vmatprep.subr.bf16.mxu1 %v2635_v39 }
 0x8d9   : > { %3563 = vmatpush3.bf16.msra.mxu0 %v2635_v39  ;;  %3602 = vmatpush3.bf16.msra.mxu1 %v2635_v39 }
 0x8da   : > { %3564 = vmatprep.subr.bf16.mxu0 %v2634_v44  ;;  %3595 = vmatprep.subr.bf16.mxu1 %v2634_v44 }
 0x8dd   : > { %3565 = vmatpush3.bf16.msra.mxu0 %v2634_v44  ;;  %3603 = vmatpush3.bf16.msra.mxu1 %v2634_v44 }
 0x8de   : > { %3566 = vmatprep.subr.bf16.mxu0 %v2633_v61  ;;  %3596 = vmatprep.subr.bf16.mxu1 %v2633_v61 }
 0x8e1   : > { %3567 = vmatpush3.bf16.msra.mxu0 %v2633_v61  ;;  %3604 = vmatpush3.bf16.msra.mxu1 %v2633_v61 }
 0x8e2   : > { %3568 = vmatprep.subr.bf16.mxu0 %v2632_v57  ;;  %3597 = vmatprep.subr.bf16.mxu1 %v2632_v57 }
 0x8e5   : > { %3569 = vmatpush3.bf16.msra.mxu0 %v2632_v57  ;;  %3605 = vmatpush3.bf16.msra.mxu1 %v2632_v57 }
 0x8e6   : > { %3570 = vmatprep.subr.bf16.mxu0 %v2631_v11  ;;  %3598 = vmatprep.subr.bf16.mxu1 %v2631_v11 }
 0x8e9   : > { %3571 = vmatpush3.bf16.msra.mxu0 %v2631_v11  ;;  %3606 = vmatpush3.bf16.msra.mxu1 %v2631_v11 }
 0x8ea   : > { %3572 = vmatprep.subr.bf16.mxu0 %v2630_v50  ;;  %3599 = vmatprep.subr.bf16.mxu1 %v2630_v50 }
 0x8ed   : > { %3573 = vmatpush3.bf16.msra.mxu0 %v2630_v50  ;;  %3607 = vmatpush3.bf16.msra.mxu1 %v2630_v50 }
 0x8ee   : > { %3574 = vmatprep.subr.bf16.mxu0 %v2629_v63  ;;  %3600 = vmatprep.subr.bf16.mxu1 %v2629_v63 }
 0x8f1   : > { %3575 = vmatpush3.bf16.msra.mxu0 %v2629_v63  ;;  %3608 = vmatpush3.bf16.msra.mxu1 %v2629_v63 }
 0x8f2   : > { %3576 = vmatprep.subr.bf16.mxu0 %v2628_v43  ;;  %3601 = vmatprep.subr.bf16.mxu1 %v2628_v43 }
 0x8f5   : > { %3577 = vmatpush3.bf16.msra.mxu0 %v2628_v43  ;;  %3609 = vmatpush3.bf16.msra.mxu1 %v2628_v43 }
 0x8f8   : > { %3579 = vmatmul.mubr.msk.bf16.vlgmr.msra.gmra.mxu0 %vm4424_vm14, %v4635_v15  ;;  %3591 = vmatmul.mubr.msk.bf16.vlgmr.msra.gmra.mxu1 %vm4551_vm12, %v4670_v42 }
 0x8f9   : > { %3582 = vmatprep.mubr.msk.bf16.mxu0 %vm4460_vm8, %v4642_v33 }
 0x900   : > { %3583 = vmatmul.mubr.msk.bf16.gmra.mxu0 %vm4471_vm15, %v4644_v27 }
 0x901   : > { %3586 = vmatprep.mubr.msk.bf16.mxu0 %vm4507_vm11, %v4652_v20  ;;  %vm5031_vm11 = vcmask 523264  }
 0x902   : > { %vm5032_vm12 = vmmov %vm5031_vm11 }
 0x903   : > { %vm5033_vm14 = vmmov %vm5031_vm11 }
 0x904   : > { %vm5034_vm4 = vmmov %vm5031_vm11 }
 0x905   : > { %vm5035_vm8 = vmmov %vm5034_vm4 }
 0x906   : > { %vm5036_vm15 = vmmov %vm5034_vm4 }
 0x908   : > { %3587 = vmatmul.mubr.msk.bf16.gmra.mxu0 %vm4515_vm1, %v4654_v62  ;;  %vm5037_vm1 = vmmov %vm5034_vm4 }
 0x909   : > { %vm5038_vm3 = vmmov %vm5037_vm1 }
 0x90a   : > { %vm5039_vm9 = vmmov %vm5037_vm1 }
 0x90b   : > { %vm5040_vm7 = vmmov %vm5037_vm1 }
 0x90c   : > { %vm5041_vm13 = vmmov %vm5037_vm1 }
 0x90d   : > { %vm5042_vm10 = vmmov %vm5037_vm1 }
 0x90e   : > { %vm5043_vm5 = vmmov %vm5037_vm1 }
 0x90f   : > { %vm5044_vm6 = vmmov %vm5037_vm1 }
 0x910   : > { %vm5045_vm0 = vmmov %vm5037_vm1 }
 0x911   : > { %vm5046_vm2 = vmmov %vm5045_vm0 }
 0x9b8   : > { %v3580_v24 = vpop.f32.mrf.mxu0  ;;  %v3592_v49 = vpop.f32.mrf.mxu1 }
 0x9b9   : > { %v2679_v15 = vadd.f32 %v3580_v24, %v2614_v5  ;;  %v2727_v42 = vadd.f32 %v3592_v49, %v4776_v54 }
 0x9ba   : > { %v2670_v46 = vpop.f32.mrf.mxu0  ;;  %v2718_v33 = vpop.f32.mrf.mxu1 }
 0x9bb   : > { %v2735_v27 = vmul.f32 %v3852_v3, %v2679_v15  ;;  %v2747_v26 = vmul.f32 %v4769_v37, %v2727_v42  ;;  %v2671_v20 = vadd.f32 %v2670_v46, %v2612_v58  ;;  %v2719_v60 = vadd.f32 %v2718_v33, %v4784_v14 }
 0x9bc   : > { %v3581_v51 = vpop.f32.mrf.mxu0  ;;  %v3593_v62 = vpop.f32.mrf.mxu1 }
 0x9bd   : > { %v2758_v13 = vadd.f32 %v4871_v7, %v2735_v27  ;;  %v2770_v52 = vadd.f32 %v4871_v7, %v2747_v26  ;;  %v2733_v30 = vmul.f32 %v3856_v53, %v2671_v20  ;;  %v2745_v37 = vmul.f32 %v4773_v47, %v2719_v60 }
 0x9be   : > { %v2682_v1 = vadd.f32 %v3581_v51, %v2615_v17  ;;  %v2730_v54 = vadd.f32 %v3593_v62, %v4779_v34  ;;  %v2673_v21 = vpop.f32.mrf.mxu0  ;;  %v2721_v48 = vpop.f32.mrf.mxu1 }
 0x9bf   : > { %2774 = vst.msk [vmem:[%s4880_s13 + $0x10] sm:$0xff] %vm5031_vm11, %v2758_v13  ;;  %v2756_v14 = vadd.f32 %v4871_v7, %v2733_v30  ;;  %v2768_v39 = vadd.f32 %v4871_v7, %v2745_v37  ;;  %v2674_v59 = vadd.f32 %v2673_v21, %v2613_v4  ;;  %v2722_v12 = vadd.f32 %v2721_v48, %v4789_v40 }
 0x9c0   : > { %2786 = vst.msk [vmem:[%s4880_s13 + $0x70] sm:$0xff] %vm5032_vm12, %v2770_v52  ;;  %v2736_v44 = vmul.f32 %v3850_v31, %v2682_v1  ;;  %v2748_v47 = vmul.f32 %v4771_v29, %v2730_v54  ;;  %v3584_v28 = vpop.f32.mrf.mxu0 }
 0x9c1   : > { %2772 = vst.msk [vmem:[%s4880_s13] sm:$0xff] %vm5033_vm14, %v2756_v14  ;;  %v2734_v34 = vmul.f32 %v3854_v35, %v2674_v59  ;;  %v2746_v38 = vmul.f32 %v4781_v45, %v2722_v12  ;;  %v2695_v25 = vadd.f32 %v3584_v28, %v4829_v9 }
 0x9c2   : > { %2784 = vst.msk [vmem:[%s4880_s13 + $0x60] sm:$0xff] %vm5034_vm4, %v2768_v39  ;;  %v2759_v61 = vadd.f32 %v4871_v7, %v2736_v44  ;;  %v2771_v40 = vadd.f32 %v4871_v7, %v2748_v47  ;;  %v2686_v57 = vpop.f32.mrf.mxu0 }
 0x9c3   : > { %v2757_v29 = vadd.f32 %v4871_v7, %v2734_v34  ;;  %v2769_v11 = vadd.f32 %v4871_v7, %v2746_v38  ;;  %v2739_v31 = vmul.f32 %v4823_v10, %v2695_v25  ;;  %v2687_v17 = vadd.f32 %v2686_v57, %v4841_v23 }
 0x9c4   : > { %2775 = vst.msk [vmem:[%s4880_s13 + $0x18] sm:$0xff] %vm5035_vm8, %v2759_v61  ;;  %v3585_v45 = vpop.f32.mrf.mxu0 }
 0x9c5   : > { %2787 = vst.msk [vmem:[%s4880_s13 + $0x78] sm:$0xff] %vm5036_vm15, %v2771_v40  ;;  %v2762_v9 = vadd.f32 %v4871_v7, %v2739_v31  ;;  %v2737_v50 = vmul.f32 %v4837_v16, %v2687_v17  ;;  %v2698_v3 = vadd.f32 %v3585_v45, %v4819_v18 }
 0x9c6   : > { %2773 = vst.msk [vmem:[%s4880_s13 + $0x8] sm:$0xff] %vm5037_vm1, %v2757_v29  ;;  %v2689_v10 = vpop.f32.mrf.mxu0 }
 0x9c7   : > { %2785 = vst.msk [vmem:[%s4880_s13 + $0x68] sm:$0xff] %vm5038_vm3, %v2769_v11  ;;  %v2760_v23 = vadd.f32 %v4871_v7, %v2737_v50  ;;  %v2740_v5 = vmul.f32 %v4815_v2, %v2698_v3  ;;  %v2690_v35 = vadd.f32 %v2689_v10, %v4835_v41 }
 0x9c8   : > { %2778 = vst.msk [vmem:[%s4880_s13 + $0x30] sm:$0xff] %vm5039_vm9, %v2762_v9  ;;  %v3588_v63 = vpop.f32.mrf.mxu0 }
 0x9c9   : > { %2776 = vst.msk [vmem:[%s4880_s13 + $0x20] sm:$0xff] %vm5040_vm7, %v2760_v23  ;;  %v2763_v4 = vadd.f32 %v4871_v7, %v2740_v5  ;;  %v2738_v16 = vmul.f32 %v4825_v55, %v2690_v35  ;;  %v2711_v18 = vadd.f32 %v3588_v63, %v4801_v6 }
 0x9ca   : > { %v2702_v53 = vpop.f32.mrf.mxu0 }
 0x9cb   : > { %2779 = vst.msk [vmem:[%s4880_s13 + $0x38] sm:$0xff] %vm5041_vm13, %v2763_v4  ;;  %v2761_v58 = vadd.f32 %v4871_v7, %v2738_v16  ;;  %v2743_v2 = vmul.f32 %v4798_v19, %v2711_v18  ;;  %v2703_v41 = vadd.f32 %v2702_v53, %v4813_v22 }
 0x9cc   : > { %v3589_v43 = vpop.f32.mrf.mxu0 }
 0x9cd   : > { %2777 = vst.msk [vmem:[%s4880_s13 + $0x28] sm:$0xff] %vm5042_vm10, %v2761_v58  ;;  %v2766_v24 = vadd.f32 %v4871_v7, %v2743_v2  ;;  %v2741_v55 = vmul.f32 %v4810_v56, %v2703_v41  ;;  %v2714_v6 = vadd.f32 %v3589_v43, %v4794_v32 }
 0x9ce   : > { %v2705_v49 = vpop.f32.mrf.mxu0 }
 0x9cf   : > { %2782 = vst.msk [vmem:[%s4880_s13 + $0x50] sm:$0xff] %vm5043_vm5, %v2766_v24  ;;  %v2764_v15 = vadd.f32 %v4871_v7, %v2741_v55  ;;  %v2744_v42 = vmul.f32 %v4791_v36, %v2714_v6  ;;  %v2706_v19 = vadd.f32 %v2705_v49, %v4808_v0 }
 0x9d1   : > { %2780 = vst.msk [vmem:[%s4880_s13 + $0x40] sm:$0xff] %vm5044_vm6, %v2764_v15  ;;  %v2767_v22 = vadd.f32 %v4871_v7, %v2744_v42  ;;  %v2742_v46 = vmul.f32 %v4803_v8, %v2706_v19 }
 0x9d3   : > { %2783 = vst.msk [vmem:[%s4880_s13 + $0x58] sm:$0xff] %vm5045_vm0, %v2767_v22  ;;  %v2765_v56 = vadd.f32 %v4871_v7, %v2742_v46 }
 0x9d5   : > { %2781 = vst.msk [vmem:[%s4880_s13 + $0x48] sm:$0xff] %vm5046_vm2, %v2765_v56 }
 0x9d6 PF: > { %s21_s17 = sadd.s32 1, %s3877_s17  }
 0x9d7   : > { %p18_p4 = scmp.ge.s32.totalorder %s21_s17, 4  }
 0x9d9   :  { %20 = sbr.rel (!%p18_p4) target bundleno = 1 (0x1), region = 97 }

</bundles_post_ra>
